<compile_context>
chip_gen: v7x
topology: tpu7x:2x2x1
jax: 0.10.0
libtpu: 0.0.40
codegen_flags: <defaults>
</compile_context>

<pallas_src>
import functools

import jax
import jax.numpy as jnp
from jax.experimental import pallas as pl
from jax.experimental.pallas import tpu as pltpu
import numpy as np

# ----------------------------- configuration ------------------------------
NUM_LAYERS = 2
INPUT_SIZE = 16
HIDDEN_SIZE = 32
OUTPUT_SIZE = 4
SEQ_LEN = 8


# ------------------------------ Pallas kernel -----------------------------
def _make_lstm_kernel(num_layers, seq_len, hidden):
    H = hidden

    def kernel(*refs):
        # inputs
        x_ref = refs[0]                      # (seq, I)
        h0_ref = refs[1]                     # (L, H)
        c0_ref = refs[2]                     # (L, H)
        w_refs = refs[3:3 + 3 * num_layers]  # per layer: wihT, whhT, bias
        wout_ref = refs[3 + 3 * num_layers]  # (H, O)
        bout_ref = refs[4 + 3 * num_layers]  # (1, O)
        # outputs
        y_ref = refs[5 + 3 * num_layers]     # (1, O)
        hn_ref = refs[6 + 3 * num_layers]    # (L, H)
        cn_ref = refs[7 + 3 * num_layers]    # (L, H)
        # scratch
        buf_ref = refs[8 + 3 * num_layers]   # (seq, H) hidden seq of current layer

        h_last = None
        for l in range(num_layers):          # static python unroll over layers
            wih = w_refs[3 * l][...]         # (I_l, 4H)
            whh = w_refs[3 * l + 1][...]     # (H, 4H)
            b = w_refs[3 * l + 2][...]       # (1, 4H)

            # Hoisted input-to-hidden matmul + bias: one (seq, I_l)x(I_l, 4H)
            # MXU call per layer instead of `seq_len` M=1 matmuls inside the
            # recurrence.  Layer 0 reads x; deeper layers read the previous
            # layer's full hidden sequence (buf_ref is complete at this point
            # because layers are processed strictly sequentially).  `pre` is
            # (seq, 4H) = one f32 vreg, kept live in registers.
            seq_in = x_ref[...] if l == 0 else buf_ref[...]
            pre = jnp.dot(seq_in, wih, preferred_element_type=jnp.float32) + b

            h = h0_ref[l:l + 1, :]           # (1, H)
            c = c0_ref[l:l + 1, :]           # (1, H)
            is_last_layer = (l == num_layers - 1)

            # seq_len is a small static constant -> fully-unrolled static
            # loop; every slice index is static so no dynamic-slice lowering
            # sits on the recurrence's critical path.
            for t in range(seq_len):
                # Only the hidden-to-hidden matmul stays on the serial path.
                # TODO(synk): on v5e/v6e, W_hh could be held in the MXU weight
                # staging registers across all timesteps via
                # pltpu.matmul_push_rhs/matmul_acc_lhs/matmul_pop.
                gates = (pre[t:t + 1, :]
                         + jnp.dot(h, whh,
                                   preferred_element_type=jnp.float32))  # (1, 4H)
                # Full-vreg nonlinearities: one sigmoid + one tanh over all
                # 4H = 128 lanes (EUP slot is free), then slice the gates.
                sig = jax.nn.sigmoid(gates)
                tnh = jnp.tanh(gates)
                i_g = sig[:, 0 * H:1 * H]
                f_g = sig[:, 1 * H:2 * H]
                g_g = tnh[:, 2 * H:3 * H]
                o_g = sig[:, 3 * H:4 * H]
                c = f_g * c + i_g * g_g
                h = o_g * jnp.tanh(c)
                if not is_last_layer:
                    # Only non-final layers need their full hidden sequence.
                    buf_ref[t:t + 1, :] = h

            hn_ref[l:l + 1, :] = h           # once per layer (not per step)
            cn_ref[l:l + 1, :] = c
            h_last = h

        # output head on the last timestep of the last layer (== h_last)
        y_ref[...] = (jnp.dot(h_last, wout_ref[...],
                              preferred_element_type=jnp.float32)
                      + bout_ref[...])

    return kernel


@functools.partial(jax.jit, static_argnames=("num_layers", "seq_len",
                                             "hidden", "output_size"))
def lstm_forward(x, h0, c0, layer_params, wout_t, bout,
                 *, num_layers, seq_len, hidden, output_size):
    """layer_params: flat tuple (wih0_T, whh0_T, b0, wih1_T, whh1_T, b1, ...)."""
    kernel = _make_lstm_kernel(num_layers, seq_len, hidden)

    inputs = (x, h0, c0) + tuple(layer_params) + (wout_t, bout)
    n_in = len(inputs)

    # Everything (weights + activations + scratch) is < ~100 KB: keep it
    # whole-array VMEM-resident with no grid / no pipelining.
    vmem_spec = pl.BlockSpec(memory_space=pltpu.MemorySpace.VMEM)

    out_shape = (
        jax.ShapeDtypeStruct((1, output_size), jnp.float32),      # y
        jax.ShapeDtypeStruct((num_layers, hidden), jnp.float32),  # h_n
        jax.ShapeDtypeStruct((num_layers, hidden), jnp.float32),  # c_n
    )

    y, h_n, c_n = pl.pallas_call(
        kernel,
        out_shape=out_shape,
        in_specs=[vmem_spec] * n_in,
        out_specs=(vmem_spec, vmem_spec, vmem_spec),
        scratch_shapes=[
            pltpu.VMEM((seq_len, hidden), jnp.float32),  # layer hidden sequence
        ],
    )(*inputs)

    return y[0], h_n, c_n  # y[0] -> (output_size,), matching output_layer(x[-1])


# --------------------------- pure-JAX reference ----------------------------
def lstm_reference(x, h0, c0, layer_params, wout_t, bout, *, num_layers, hidden):
    H = hidden
    seq_in = x
    hs, cs = [], []
    for l in range(num_layers):
        wih_t, whh_t, b = layer_params[3 * l:3 * l + 3]
        h = h0[l]
        c = c0[l]
        outs = []
        for t in range(seq_in.shape[0]):
            g = seq_in[t] @ wih_t + h @ whh_t + b[0]
            i_g = jax.nn.sigmoid(g[0 * H:1 * H])
            f_g = jax.nn.sigmoid(g[1 * H:2 * H])
            g_g = jnp.tanh(g[2 * H:3 * H])
            o_g = jax.nn.sigmoid(g[3 * H:4 * H])
            c = f_g * c + i_g * g_g
            h = o_g * jnp.tanh(c)
            outs.append(h)
        seq_in = jnp.stack(outs)
        hs.append(h)
        cs.append(c)
    y = seq_in[-1] @ wout_t + bout[0]
    return y, jnp.stack(hs), jnp.stack(cs)


# ---------------------------------- main -----------------------------------
if __name__ == "__main__":
    key = jax.random.PRNGKey(0)
    keys = jax.random.split(key, 4 * NUM_LAYERS + 4)
    kidx = 0

    # PyTorch-style uniform(-1/sqrt(H), 1/sqrt(H)) init, deterministic.
    bound = 1.0 / float(np.sqrt(HIDDEN_SIZE))

    def uni(k, shape):
        return jax.random.uniform(k, shape, jnp.float32, -bound, bound)

    layer_params = []
    for l in range(NUM_LAYERS):
        in_dim = INPUT_SIZE if l == 0 else HIDDEN_SIZE
        w_ih = uni(keys[kidx], (4 * HIDDEN_SIZE, in_dim)); kidx += 1
        w_hh = uni(keys[kidx], (4 * HIDDEN_SIZE, HIDDEN_SIZE)); kidx += 1
        b_ih = uni(keys[kidx], (4 * HIDDEN_SIZE,)); kidx += 1
        b_hh = uni(keys[kidx], (4 * HIDDEN_SIZE,)); kidx += 1
        # pre-transpose for x @ W^T, fold the two biases together
        layer_params += [w_ih.T, w_hh.T, (b_ih + b_hh)[None, :]]
    layer_params = tuple(layer_params)

    w_out = uni(keys[kidx], (OUTPUT_SIZE, HIDDEN_SIZE)); kidx += 1
    b_out = uni(keys[kidx], (OUTPUT_SIZE,)); kidx += 1
    wout_t = w_out.T
    bout = b_out[None, :]

    # inputs: unbatched, time-major (seq, input_size); h0/c0 default zeros
    x = jax.random.normal(keys[kidx], (SEQ_LEN, INPUT_SIZE), jnp.float32); kidx += 1
    h0 = jnp.zeros((NUM_LAYERS, HIDDEN_SIZE), jnp.float32)
    c0 = jnp.zeros((NUM_LAYERS, HIDDEN_SIZE), jnp.float32)

    y, h_n, c_n = lstm_forward(
        x, h0, c0, layer_params, wout_t, bout,
        num_layers=NUM_LAYERS, seq_len=SEQ_LEN,
        hidden=HIDDEN_SIZE, output_size=OUTPUT_SIZE)
    jax.block_until_ready((y, h_n, c_n))

    y_ref, h_ref, c_ref = lstm_reference(
        x, h0, c0, layer_params, wout_t, bout,
        num_layers=NUM_LAYERS, hidden=HIDDEN_SIZE)

    np.testing.assert_allclose(np.asarray(y), np.asarray(y_ref), rtol=2e-3, atol=2e-3)
    np.testing.assert_allclose(np.asarray(h_n), np.asarray(h_ref), rtol=2e-3, atol=2e-3)
    np.testing.assert_allclose(np.asarray(c_n), np.asarray(c_ref), rtol=2e-3, atol=2e-3)

    # TODO(synk): calculate_loss / loss_equation use pygame game state and are
    # not part of the forward pass; not implemented as a kernel.
    print("KERNEL_OK")
</pallas_src>

<mosaic_0001>
module attributes {stable_mosaic.version = 11 : i64} {
  func.func @kernel(%arg0: memref<8x16xf32, #tpu.memory_space<vmem>>, %arg1: memref<2x32xf32, #tpu.memory_space<vmem>>, %arg2: memref<2x32xf32, #tpu.memory_space<vmem>>, %arg3: memref<16x128xf32, #tpu.memory_space<vmem>>, %arg4: memref<32x128xf32, #tpu.memory_space<vmem>>, %arg5: memref<1x128xf32, #tpu.memory_space<vmem>>, %arg6: memref<32x128xf32, #tpu.memory_space<vmem>>, %arg7: memref<32x128xf32, #tpu.memory_space<vmem>>, %arg8: memref<1x128xf32, #tpu.memory_space<vmem>>, %arg9: memref<32x4xf32, #tpu.memory_space<vmem>>, %arg10: memref<1x4xf32, #tpu.memory_space<vmem>>, %arg11: memref<1x4xf32, #tpu.memory_space<vmem>>, %arg12: memref<2x32xf32, #tpu.memory_space<vmem>>, %arg13: memref<2x32xf32, #tpu.memory_space<vmem>>, %arg14: memref<8x32xf32, #tpu.memory_space<vmem>>) attributes {dimension_semantics = [], scalar_prefetch = 0 : i64, scratch_operands = 1 : i64, tpu.core_type = #tpu.core_type<tc>} {
    %c0 = arith.constant 0 : index
    %c0_0 = arith.constant 0 : index
    %0 = vector.load %arg3[%c0, %c0_0] : memref<16x128xf32, #tpu.memory_space<vmem>>, vector<16x128xf32>
    %c0_1 = arith.constant 0 : index
    %c0_2 = arith.constant 0 : index
    %1 = vector.load %arg4[%c0_1, %c0_2] : memref<32x128xf32, #tpu.memory_space<vmem>>, vector<32x128xf32>
    %c0_3 = arith.constant 0 : index
    %c0_4 = arith.constant 0 : index
    %2 = vector.load %arg5[%c0_3, %c0_4] : memref<1x128xf32, #tpu.memory_space<vmem>>, vector<1x128xf32>
    %c0_5 = arith.constant 0 : index
    %c0_6 = arith.constant 0 : index
    %3 = vector.load %arg0[%c0_5, %c0_6] : memref<8x16xf32, #tpu.memory_space<vmem>>, vector<8x16xf32>
    %cst = arith.constant dense<0.000000e+00> : vector<8x128xf32>
    %4 = tpu.matmul %3, %0, %cst {dimension_numbers = #tpu.dot_dimension_numbers<[1], [0], [0], [1], [0, 0, 1, 1], [], []>} : vector<8x16xf32>, vector<16x128xf32>, vector<8x128xf32> -> vector<8x128xf32>
    %5 = vector.broadcast %2 : vector<1x128xf32> to vector<8x128xf32>
    %6 = arith.addf %4, %5 : vector<8x128xf32>
    %c0_7 = arith.constant 0 : index
    %c0_8 = arith.constant 0 : index
    %7 = vector.load %arg1[%c0_7, %c0_8] : memref<2x32xf32, #tpu.memory_space<vmem>>, vector<1x32xf32>
    %c0_9 = arith.constant 0 : index
    %c0_10 = arith.constant 0 : index
    %8 = vector.load %arg2[%c0_9, %c0_10] : memref<2x32xf32, #tpu.memory_space<vmem>>, vector<1x32xf32>
    %9 = vector.extract_strided_slice %6 {offsets = [0, 0], sizes = [1, 128], strides = [1, 1]} : vector<8x128xf32> to vector<1x128xf32>
    %cst_11 = arith.constant dense<0.000000e+00> : vector<1x128xf32>
    %10 = tpu.matmul %7, %1, %cst_11 {dimension_numbers = #tpu.dot_dimension_numbers<[1], [0], [0], [1], [0, 0, 1, 1], [], []>} : vector<1x32xf32>, vector<32x128xf32>, vector<1x128xf32> -> vector<1x128xf32>
    %11 = arith.addf %9, %10 : vector<1x128xf32>
    %12 = arith.negf %11 : vector<1x128xf32>
    %13 = math.exp %12 : vector<1x128xf32>
    %cst_12 = arith.constant 1.000000e+00 : f32
    %14 = vector.broadcast %cst_12 : f32 to vector<1x128xf32>
    %15 = arith.addf %14, %13 : vector<1x128xf32>
    %16 = arith.divf %14, %15 : vector<1x128xf32>
    %17 = math.tanh %11 : vector<1x128xf32>
    %18 = vector.extract_strided_slice %16 {offsets = [0, 0], sizes = [1, 32], strides = [1, 1]} : vector<1x128xf32> to vector<1x32xf32>
    %19 = vector.extract_strided_slice %16 {offsets = [0, 32], sizes = [1, 32], strides = [1, 1]} : vector<1x128xf32> to vector<1x32xf32>
    %20 = vector.extract_strided_slice %17 {offsets = [0, 64], sizes = [1, 32], strides = [1, 1]} : vector<1x128xf32> to vector<1x32xf32>
    %21 = vector.extract_strided_slice %16 {offsets = [0, 96], sizes = [1, 32], strides = [1, 1]} : vector<1x128xf32> to vector<1x32xf32>
    %22 = arith.mulf %19, %8 : vector<1x32xf32>
    %23 = arith.mulf %18, %20 : vector<1x32xf32>
    %24 = arith.addf %22, %23 : vector<1x32xf32>
    %25 = math.tanh %24 : vector<1x32xf32>
    %26 = arith.mulf %21, %25 : vector<1x32xf32>
    %c0_13 = arith.constant 0 : index
    %c0_14 = arith.constant 0 : index
    %27 = vector.load %arg14[%c0_13, %c0_14] : memref<8x32xf32, #tpu.memory_space<vmem>>, vector<1x32xf32>
    tpu.vector_store %arg14[%c0_13, %c0_14], %26 {strides = array<i32>} : memref<8x32xf32, #tpu.memory_space<vmem>>, vector<1x32xf32>,
    %28 = vector.extract_strided_slice %6 {offsets = [1, 0], sizes = [1, 128], strides = [1, 1]} : vector<8x128xf32> to vector<1x128xf32>
    %cst_15 = arith.constant dense<0.000000e+00> : vector<1x128xf32>
    %29 = tpu.matmul %26, %1, %cst_15 {dimension_numbers = #tpu.dot_dimension_numbers<[1], [0], [0], [1], [0, 0, 1, 1], [], []>} : vector<1x32xf32>, vector<32x128xf32>, vector<1x128xf32> -> vector<1x128xf32>
    %30 = arith.addf %28, %29 : vector<1x128xf32>
    %31 = arith.negf %30 : vector<1x128xf32>
    %32 = math.exp %31 : vector<1x128xf32>
    %cst_16 = arith.constant 1.000000e+00 : f32
    %33 = vector.broadcast %cst_16 : f32 to vector<1x128xf32>
    %34 = arith.addf %33, %32 : vector<1x128xf32>
    %35 = arith.divf %33, %34 : vector<1x128xf32>
    %36 = math.tanh %30 : vector<1x128xf32>
    %37 = vector.extract_strided_slice %35 {offsets = [0, 0], sizes = [1, 32], strides = [1, 1]} : vector<1x128xf32> to vector<1x32xf32>
    %38 = vector.extract_strided_slice %35 {offsets = [0, 32], sizes = [1, 32], strides = [1, 1]} : vector<1x128xf32> to vector<1x32xf32>
    %39 = vector.extract_strided_slice %36 {offsets = [0, 64], sizes = [1, 32], strides = [1, 1]} : vector<1x128xf32> to vector<1x32xf32>
    %40 = vector.extract_strided_slice %35 {offsets = [0, 96], sizes = [1, 32], strides = [1, 1]} : vector<1x128xf32> to vector<1x32xf32>
    %41 = arith.mulf %38, %24 : vector<1x32xf32>
    %42 = arith.mulf %37, %39 : vector<1x32xf32>
    %43 = arith.addf %41, %42 : vector<1x32xf32>
    %44 = math.tanh %43 : vector<1x32xf32>
    %45 = arith.mulf %40, %44 : vector<1x32xf32>
    %c1 = arith.constant 1 : index
    %c0_17 = arith.constant 0 : index
    %46 = vector.load %arg14[%c1, %c0_17] : memref<8x32xf32, #tpu.memory_space<vmem>>, vector<1x32xf32>
    tpu.vector_store %arg14[%c1, %c0_17], %45 {strides = array<i32>} : memref<8x32xf32, #tpu.memory_space<vmem>>, vector<1x32xf32>,
    %47 = vector.extract_strided_slice %6 {offsets = [2, 0], sizes = [1, 128], strides = [1, 1]} : vector<8x128xf32> to vector<1x128xf32>
    %cst_18 = arith.constant dense<0.000000e+00> : vector<1x128xf32>
    %48 = tpu.matmul %45, %1, %cst_18 {dimension_numbers = #tpu.dot_dimension_numbers<[1], [0], [0], [1], [0, 0, 1, 1], [], []>} : vector<1x32xf32>, vector<32x128xf32>, vector<1x128xf32> -> vector<1x128xf32>
    %49 = arith.addf %47, %48 : vector<1x128xf32>
    %50 = arith.negf %49 : vector<1x128xf32>
    %51 = math.exp %50 : vector<1x128xf32>
    %cst_19 = arith.constant 1.000000e+00 : f32
    %52 = vector.broadcast %cst_19 : f32 to vector<1x128xf32>
    %53 = arith.addf %52, %51 : vector<1x128xf32>
    %54 = arith.divf %52, %53 : vector<1x128xf32>
    %55 = math.tanh %49 : vector<1x128xf32>
    %56 = vector.extract_strided_slice %54 {offsets = [0, 0], sizes = [1, 32], strides = [1, 1]} : vector<1x128xf32> to vector<1x32xf32>
    %57 = vector.extract_strided_slice %54 {offsets = [0, 32], sizes = [1, 32], strides = [1, 1]} : vector<1x128xf32> to vector<1x32xf32>
    %58 = vector.extract_strided_slice %55 {offsets = [0, 64], sizes = [1, 32], strides = [1, 1]} : vector<1x128xf32> to vector<1x32xf32>
    %59 = vector.extract_strided_slice %54 {offsets = [0, 96], sizes = [1, 32], strides = [1, 1]} : vector<1x128xf32> to vector<1x32xf32>
    %60 = arith.mulf %57, %43 : vector<1x32xf32>
    %61 = arith.mulf %56, %58 : vector<1x32xf32>
    %62 = arith.addf %60, %61 : vector<1x32xf32>
    %63 = math.tanh %62 : vector<1x32xf32>
    %64 = arith.mulf %59, %63 : vector<1x32xf32>
    %c2 = arith.constant 2 : index
    %c0_20 = arith.constant 0 : index
    %65 = vector.load %arg14[%c2, %c0_20] : memref<8x32xf32, #tpu.memory_space<vmem>>, vector<1x32xf32>
    tpu.vector_store %arg14[%c2, %c0_20], %64 {strides = array<i32>} : memref<8x32xf32, #tpu.memory_space<vmem>>, vector<1x32xf32>,
    %66 = vector.extract_strided_slice %6 {offsets = [3, 0], sizes = [1, 128], strides = [1, 1]} : vector<8x128xf32> to vector<1x128xf32>
    %cst_21 = arith.constant dense<0.000000e+00> : vector<1x128xf32>
    %67 = tpu.matmul %64, %1, %cst_21 {dimension_numbers = #tpu.dot_dimension_numbers<[1], [0], [0], [1], [0, 0, 1, 1], [], []>} : vector<1x32xf32>, vector<32x128xf32>, vector<1x128xf32> -> vector<1x128xf32>
    %68 = arith.addf %66, %67 : vector<1x128xf32>
    %69 = arith.negf %68 : vector<1x128xf32>
    %70 = math.exp %69 : vector<1x128xf32>
    %cst_22 = arith.constant 1.000000e+00 : f32
    %71 = vector.broadcast %cst_22 : f32 to vector<1x128xf32>
    %72 = arith.addf %71, %70 : vector<1x128xf32>
    %73 = arith.divf %71, %72 : vector<1x128xf32>
    %74 = math.tanh %68 : vector<1x128xf32>
    %75 = vector.extract_strided_slice %73 {offsets = [0, 0], sizes = [1, 32], strides = [1, 1]} : vector<1x128xf32> to vector<1x32xf32>
    %76 = vector.extract_strided_slice %73 {offsets = [0, 32], sizes = [1, 32], strides = [1, 1]} : vector<1x128xf32> to vector<1x32xf32>
    %77 = vector.extract_strided_slice %74 {offsets = [0, 64], sizes = [1, 32], strides = [1, 1]} : vector<1x128xf32> to vector<1x32xf32>
    %78 = vector.extract_strided_slice %73 {offsets = [0, 96], sizes = [1, 32], strides = [1, 1]} : vector<1x128xf32> to vector<1x32xf32>
    %79 = arith.mulf %76, %62 : vector<1x32xf32>
    %80 = arith.mulf %75, %77 : vector<1x32xf32>
    %81 = arith.addf %79, %80 : vector<1x32xf32>
    %82 = math.tanh %81 : vector<1x32xf32>
    %83 = arith.mulf %78, %82 : vector<1x32xf32>
    %c3 = arith.constant 3 : index
    %c0_23 = arith.constant 0 : index
    %84 = vector.load %arg14[%c3, %c0_23] : memref<8x32xf32, #tpu.memory_space<vmem>>, vector<1x32xf32>
    tpu.vector_store %arg14[%c3, %c0_23], %83 {strides = array<i32>} : memref<8x32xf32, #tpu.memory_space<vmem>>, vector<1x32xf32>,
    %85 = vector.extract_strided_slice %6 {offsets = [4, 0], sizes = [1, 128], strides = [1, 1]} : vector<8x128xf32> to vector<1x128xf32>
    %cst_24 = arith.constant dense<0.000000e+00> : vector<1x128xf32>
    %86 = tpu.matmul %83, %1, %cst_24 {dimension_numbers = #tpu.dot_dimension_numbers<[1], [0], [0], [1], [0, 0, 1, 1], [], []>} : vector<1x32xf32>, vector<32x128xf32>, vector<1x128xf32> -> vector<1x128xf32>
    %87 = arith.addf %85, %86 : vector<1x128xf32>
    %88 = arith.negf %87 : vector<1x128xf32>
    %89 = math.exp %88 : vector<1x128xf32>
    %cst_25 = arith.constant 1.000000e+00 : f32
    %90 = vector.broadcast %cst_25 : f32 to vector<1x128xf32>
    %91 = arith.addf %90, %89 : vector<1x128xf32>
    %92 = arith.divf %90, %91 : vector<1x128xf32>
    %93 = math.tanh %87 : vector<1x128xf32>
    %94 = vector.extract_strided_slice %92 {offsets = [0, 0], sizes = [1, 32], strides = [1, 1]} : vector<1x128xf32> to vector<1x32xf32>
    %95 = vector.extract_strided_slice %92 {offsets = [0, 32], sizes = [1, 32], strides = [1, 1]} : vector<1x128xf32> to vector<1x32xf32>
    %96 = vector.extract_strided_slice %93 {offsets = [0, 64], sizes = [1, 32], strides = [1, 1]} : vector<1x128xf32> to vector<1x32xf32>
    %97 = vector.extract_strided_slice %92 {offsets = [0, 96], sizes = [1, 32], strides = [1, 1]} : vector<1x128xf32> to vector<1x32xf32>
    %98 = arith.mulf %95, %81 : vector<1x32xf32>
    %99 = arith.mulf %94, %96 : vector<1x32xf32>
    %100 = arith.addf %98, %99 : vector<1x32xf32>
    %101 = math.tanh %100 : vector<1x32xf32>
    %102 = arith.mulf %97, %101 : vector<1x32xf32>
    %c4 = arith.constant 4 : index
    %c0_26 = arith.constant 0 : index
    %103 = vector.load %arg14[%c4, %c0_26] : memref<8x32xf32, #tpu.memory_space<vmem>>, vector<1x32xf32>
    tpu.vector_store %arg14[%c4, %c0_26], %102 {strides = array<i32>} : memref<8x32xf32, #tpu.memory_space<vmem>>, vector<1x32xf32>,
    %104 = vector.extract_strided_slice %6 {offsets = [5, 0], sizes = [1, 128], strides = [1, 1]} : vector<8x128xf32> to vector<1x128xf32>
    %cst_27 = arith.constant dense<0.000000e+00> : vector<1x128xf32>
    %105 = tpu.matmul %102, %1, %cst_27 {dimension_numbers = #tpu.dot_dimension_numbers<[1], [0], [0], [1], [0, 0, 1, 1], [], []>} : vector<1x32xf32>, vector<32x128xf32>, vector<1x128xf32> -> vector<1x128xf32>
    %106 = arith.addf %104, %105 : vector<1x128xf32>
    %107 = arith.negf %106 : vector<1x128xf32>
    %108 = math.exp %107 : vector<1x128xf32>
    %cst_28 = arith.constant 1.000000e+00 : f32
    %109 = vector.broadcast %cst_28 : f32 to vector<1x128xf32>
    %110 = arith.addf %109, %108 : vector<1x128xf32>
    %111 = arith.divf %109, %110 : vector<1x128xf32>
    %112 = math.tanh %106 : vector<1x128xf32>
    %113 = vector.extract_strided_slice %111 {offsets = [0, 0], sizes = [1, 32], strides = [1, 1]} : vector<1x128xf32> to vector<1x32xf32>
    %114 = vector.extract_strided_slice %111 {offsets = [0, 32], sizes = [1, 32], strides = [1, 1]} : vector<1x128xf32> to vector<1x32xf32>
    %115 = vector.extract_strided_slice %112 {offsets = [0, 64], sizes = [1, 32], strides = [1, 1]} : vector<1x128xf32> to vector<1x32xf32>
    %116 = vector.extract_strided_slice %111 {offsets = [0, 96], sizes = [1, 32], strides = [1, 1]} : vector<1x128xf32> to vector<1x32xf32>
    %117 = arith.mulf %114, %100 : vector<1x32xf32>
    %118 = arith.mulf %113, %115 : vector<1x32xf32>
    %119 = arith.addf %117, %118 : vector<1x32xf32>
    %120 = math.tanh %119 : vector<1x32xf32>
    %121 = arith.mulf %116, %120 : vector<1x32xf32>
    %c5 = arith.constant 5 : index
    %c0_29 = arith.constant 0 : index
    %122 = vector.load %arg14[%c5, %c0_29] : memref<8x32xf32, #tpu.memory_space<vmem>>, vector<1x32xf32>
    tpu.vector_store %arg14[%c5, %c0_29], %121 {strides = array<i32>} : memref<8x32xf32, #tpu.memory_space<vmem>>, vector<1x32xf32>,
    %123 = vector.extract_strided_slice %6 {offsets = [6, 0], sizes = [1, 128], strides = [1, 1]} : vector<8x128xf32> to vector<1x128xf32>
    %cst_30 = arith.constant dense<0.000000e+00> : vector<1x128xf32>
    %124 = tpu.matmul %121, %1, %cst_30 {dimension_numbers = #tpu.dot_dimension_numbers<[1], [0], [0], [1], [0, 0, 1, 1], [], []>} : vector<1x32xf32>, vector<32x128xf32>, vector<1x128xf32> -> vector<1x128xf32>
    %125 = arith.addf %123, %124 : vector<1x128xf32>
    %126 = arith.negf %125 : vector<1x128xf32>
    %127 = math.exp %126 : vector<1x128xf32>
    %cst_31 = arith.constant 1.000000e+00 : f32
    %128 = vector.broadcast %cst_31 : f32 to vector<1x128xf32>
    %129 = arith.addf %128, %127 : vector<1x128xf32>
    %130 = arith.divf %128, %129 : vector<1x128xf32>
    %131 = math.tanh %125 : vector<1x128xf32>
    %132 = vector.extract_strided_slice %130 {offsets = [0, 0], sizes = [1, 32], strides = [1, 1]} : vector<1x128xf32> to vector<1x32xf32>
    %133 = vector.extract_strided_slice %130 {offsets = [0, 32], sizes = [1, 32], strides = [1, 1]} : vector<1x128xf32> to vector<1x32xf32>
    %134 = vector.extract_strided_slice %131 {offsets = [0, 64], sizes = [1, 32], strides = [1, 1]} : vector<1x128xf32> to vector<1x32xf32>
    %135 = vector.extract_strided_slice %130 {offsets = [0, 96], sizes = [1, 32], strides = [1, 1]} : vector<1x128xf32> to vector<1x32xf32>
    %136 = arith.mulf %133, %119 : vector<1x32xf32>
    %137 = arith.mulf %132, %134 : vector<1x32xf32>
    %138 = arith.addf %136, %137 : vector<1x32xf32>
    %139 = math.tanh %138 : vector<1x32xf32>
    %140 = arith.mulf %135, %139 : vector<1x32xf32>
    %c6 = arith.constant 6 : index
    %c0_32 = arith.constant 0 : index
    %141 = vector.load %arg14[%c6, %c0_32] : memref<8x32xf32, #tpu.memory_space<vmem>>, vector<1x32xf32>
    tpu.vector_store %arg14[%c6, %c0_32], %140 {strides = array<i32>} : memref<8x32xf32, #tpu.memory_space<vmem>>, vector<1x32xf32>,
    %142 = vector.extract_strided_slice %6 {offsets = [7, 0], sizes = [1, 128], strides = [1, 1]} : vector<8x128xf32> to vector<1x128xf32>
    %cst_33 = arith.constant dense<0.000000e+00> : vector<1x128xf32>
    %143 = tpu.matmul %140, %1, %cst_33 {dimension_numbers = #tpu.dot_dimension_numbers<[1], [0], [0], [1], [0, 0, 1, 1], [], []>} : vector<1x32xf32>, vector<32x128xf32>, vector<1x128xf32> -> vector<1x128xf32>
    %144 = arith.addf %142, %143 : vector<1x128xf32>
    %145 = arith.negf %144 : vector<1x128xf32>
    %146 = math.exp %145 : vector<1x128xf32>
    %cst_34 = arith.constant 1.000000e+00 : f32
    %147 = vector.broadcast %cst_34 : f32 to vector<1x128xf32>
    %148 = arith.addf %147, %146 : vector<1x128xf32>
    %149 = arith.divf %147, %148 : vector<1x128xf32>
    %150 = math.tanh %144 : vector<1x128xf32>
    %151 = vector.extract_strided_slice %149 {offsets = [0, 0], sizes = [1, 32], strides = [1, 1]} : vector<1x128xf32> to vector<1x32xf32>
    %152 = vector.extract_strided_slice %149 {offsets = [0, 32], sizes = [1, 32], strides = [1, 1]} : vector<1x128xf32> to vector<1x32xf32>
    %153 = vector.extract_strided_slice %150 {offsets = [0, 64], sizes = [1, 32], strides = [1, 1]} : vector<1x128xf32> to vector<1x32xf32>
    %154 = vector.extract_strided_slice %149 {offsets = [0, 96], sizes = [1, 32], strides = [1, 1]} : vector<1x128xf32> to vector<1x32xf32>
    %155 = arith.mulf %152, %138 : vector<1x32xf32>
    %156 = arith.mulf %151, %153 : vector<1x32xf32>
    %157 = arith.addf %155, %156 : vector<1x32xf32>
    %158 = math.tanh %157 : vector<1x32xf32>
    %159 = arith.mulf %154, %158 : vector<1x32xf32>
    %c7 = arith.constant 7 : index
    %c0_35 = arith.constant 0 : index
    %160 = vector.load %arg14[%c7, %c0_35] : memref<8x32xf32, #tpu.memory_space<vmem>>, vector<1x32xf32>
    tpu.vector_store %arg14[%c7, %c0_35], %159 {strides = array<i32>} : memref<8x32xf32, #tpu.memory_space<vmem>>, vector<1x32xf32>,
    %c0_36 = arith.constant 0 : index
    %c0_37 = arith.constant 0 : index
    %161 = vector.load %arg12[%c0_36, %c0_37] : memref<2x32xf32, #tpu.memory_space<vmem>>, vector<1x32xf32>
    tpu.vector_store %arg12[%c0_36, %c0_37], %159 {strides = array<i32>} : memref<2x32xf32, #tpu.memory_space<vmem>>, vector<1x32xf32>,
    %c0_38 = arith.constant 0 : index
    %c0_39 = arith.constant 0 : index
    %162 = vector.load %arg13[%c0_38, %c0_39] : memref<2x32xf32, #tpu.memory_space<vmem>>, vector<1x32xf32>
    tpu.vector_store %arg13[%c0_38, %c0_39], %157 {strides = array<i32>} : memref<2x32xf32, #tpu.memory_space<vmem>>, vector<1x32xf32>,
    %c0_40 = arith.constant 0 : index
    %c0_41 = arith.constant 0 : index
    %163 = vector.load %arg6[%c0_40, %c0_41] : memref<32x128xf32, #tpu.memory_space<vmem>>, vector<32x128xf32>
    %c0_42 = arith.constant 0 : index
    %c0_43 = arith.constant 0 : index
    %164 = vector.load %arg7[%c0_42, %c0_43] : memref<32x128xf32, #tpu.memory_space<vmem>>, vector<32x128xf32>
    %c0_44 = arith.constant 0 : index
    %c0_45 = arith.constant 0 : index
    %165 = vector.load %arg8[%c0_44, %c0_45] : memref<1x128xf32, #tpu.memory_space<vmem>>, vector<1x128xf32>
    %c0_46 = arith.constant 0 : index
    %c0_47 = arith.constant 0 : index
    %166 = vector.load %arg14[%c0_46, %c0_47] : memref<8x32xf32, #tpu.memory_space<vmem>>, vector<8x32xf32>
    %cst_48 = arith.constant dense<0.000000e+00> : vector<8x128xf32>
    %167 = tpu.matmul %166, %163, %cst_48 {dimension_numbers = #tpu.dot_dimension_numbers<[1], [0], [0], [1], [0, 0, 1, 1], [], []>} : vector<8x32xf32>, vector<32x128xf32>, vector<8x128xf32> -> vector<8x128xf32>
    %168 = vector.broadcast %165 : vector<1x128xf32> to vector<8x128xf32>
    %169 = arith.addf %167, %168 : vector<8x128xf32>
    %c1_49 = arith.constant 1 : index
    %c0_50 = arith.constant 0 : index
    %170 = vector.load %arg1[%c1_49, %c0_50] : memref<2x32xf32, #tpu.memory_space<vmem>>, vector<1x32xf32>
    %c1_51 = arith.constant 1 : index
    %c0_52 = arith.constant 0 : index
    %171 = vector.load %arg2[%c1_51, %c0_52] : memref<2x32xf32, #tpu.memory_space<vmem>>, vector<1x32xf32>
    %172 = vector.extract_strided_slice %169 {offsets = [0, 0], sizes = [1, 128], strides = [1, 1]} : vector<8x128xf32> to vector<1x128xf32>
    %cst_53 = arith.constant dense<0.000000e+00> : vector<1x128xf32>
    %173 = tpu.matmul %170, %164, %cst_53 {dimension_numbers = #tpu.dot_dimension_numbers<[1], [0], [0], [1], [0, 0, 1, 1], [], []>} : vector<1x32xf32>, vector<32x128xf32>, vector<1x128xf32> -> vector<1x128xf32>
    %174 = arith.addf %172, %173 : vector<1x128xf32>
    %175 = arith.negf %174 : vector<1x128xf32>
    %176 = math.exp %175 : vector<1x128xf32>
    %cst_54 = arith.constant 1.000000e+00 : f32
    %177 = vector.broadcast %cst_54 : f32 to vector<1x128xf32>
    %178 = arith.addf %177, %176 : vector<1x128xf32>
    %179 = arith.divf %177, %178 : vector<1x128xf32>
    %180 = math.tanh %174 : vector<1x128xf32>
    %181 = vector.extract_strided_slice %179 {offsets = [0, 0], sizes = [1, 32], strides = [1, 1]} : vector<1x128xf32> to vector<1x32xf32>
    %182 = vector.extract_strided_slice %179 {offsets = [0, 32], sizes = [1, 32], strides = [1, 1]} : vector<1x128xf32> to vector<1x32xf32>
    %183 = vector.extract_strided_slice %180 {offsets = [0, 64], sizes = [1, 32], strides = [1, 1]} : vector<1x128xf32> to vector<1x32xf32>
    %184 = vector.extract_strided_slice %179 {offsets = [0, 96], sizes = [1, 32], strides = [1, 1]} : vector<1x128xf32> to vector<1x32xf32>
    %185 = arith.mulf %182, %171 : vector<1x32xf32>
    %186 = arith.mulf %181, %183 : vector<1x32xf32>
    %187 = arith.addf %185, %186 : vector<1x32xf32>
    %188 = math.tanh %187 : vector<1x32xf32>
    %189 = arith.mulf %184, %188 : vector<1x32xf32>
    %190 = vector.extract_strided_slice %169 {offsets = [1, 0], sizes = [1, 128], strides = [1, 1]} : vector<8x128xf32> to vector<1x128xf32>
    %cst_55 = arith.constant dense<0.000000e+00> : vector<1x128xf32>
    %191 = tpu.matmul %189, %164, %cst_55 {dimension_numbers = #tpu.dot_dimension_numbers<[1], [0], [0], [1], [0, 0, 1, 1], [], []>} : vector<1x32xf32>, vector<32x128xf32>, vector<1x128xf32> -> vector<1x128xf32>
    %192 = arith.addf %190, %191 : vector<1x128xf32>
    %193 = arith.negf %192 : vector<1x128xf32>
    %194 = math.exp %193 : vector<1x128xf32>
    %cst_56 = arith.constant 1.000000e+00 : f32
    %195 = vector.broadcast %cst_56 : f32 to vector<1x128xf32>
    %196 = arith.addf %195, %194 : vector<1x128xf32>
    %197 = arith.divf %195, %196 : vector<1x128xf32>
    %198 = math.tanh %192 : vector<1x128xf32>
    %199 = vector.extract_strided_slice %197 {offsets = [0, 0], sizes = [1, 32], strides = [1, 1]} : vector<1x128xf32> to vector<1x32xf32>
    %200 = vector.extract_strided_slice %197 {offsets = [0, 32], sizes = [1, 32], strides = [1, 1]} : vector<1x128xf32> to vector<1x32xf32>
    %201 = vector.extract_strided_slice %198 {offsets = [0, 64], sizes = [1, 32], strides = [1, 1]} : vector<1x128xf32> to vector<1x32xf32>
    %202 = vector.extract_strided_slice %197 {offsets = [0, 96], sizes = [1, 32], strides = [1, 1]} : vector<1x128xf32> to vector<1x32xf32>
    %203 = arith.mulf %200, %187 : vector<1x32xf32>
    %204 = arith.mulf %199, %201 : vector<1x32xf32>
    %205 = arith.addf %203, %204 : vector<1x32xf32>
    %206 = math.tanh %205 : vector<1x32xf32>
    %207 = arith.mulf %202, %206 : vector<1x32xf32>
    %208 = vector.extract_strided_slice %169 {offsets = [2, 0], sizes = [1, 128], strides = [1, 1]} : vector<8x128xf32> to vector<1x128xf32>
    %cst_57 = arith.constant dense<0.000000e+00> : vector<1x128xf32>
    %209 = tpu.matmul %207, %164, %cst_57 {dimension_numbers = #tpu.dot_dimension_numbers<[1], [0], [0], [1], [0, 0, 1, 1], [], []>} : vector<1x32xf32>, vector<32x128xf32>, vector<1x128xf32> -> vector<1x128xf32>
    %210 = arith.addf %208, %209 : vector<1x128xf32>
    %211 = arith.negf %210 : vector<1x128xf32>
    %212 = math.exp %211 : vector<1x128xf32>
    %cst_58 = arith.constant 1.000000e+00 : f32
    %213 = vector.broadcast %cst_58 : f32 to vector<1x128xf32>
    %214 = arith.addf %213, %212 : vector<1x128xf32>
    %215 = arith.divf %213, %214 : vector<1x128xf32>
    %216 = math.tanh %210 : vector<1x128xf32>
    %217 = vector.extract_strided_slice %215 {offsets = [0, 0], sizes = [1, 32], strides = [1, 1]} : vector<1x128xf32> to vector<1x32xf32>
    %218 = vector.extract_strided_slice %215 {offsets = [0, 32], sizes = [1, 32], strides = [1, 1]} : vector<1x128xf32> to vector<1x32xf32>
    %219 = vector.extract_strided_slice %216 {offsets = [0, 64], sizes = [1, 32], strides = [1, 1]} : vector<1x128xf32> to vector<1x32xf32>
    %220 = vector.extract_strided_slice %215 {offsets = [0, 96], sizes = [1, 32], strides = [1, 1]} : vector<1x128xf32> to vector<1x32xf32>
    %221 = arith.mulf %218, %205 : vector<1x32xf32>
    %222 = arith.mulf %217, %219 : vector<1x32xf32>
    %223 = arith.addf %221, %222 : vector<1x32xf32>
    %224 = math.tanh %223 : vector<1x32xf32>
    %225 = arith.mulf %220, %224 : vector<1x32xf32>
    %226 = vector.extract_strided_slice %169 {offsets = [3, 0], sizes = [1, 128], strides = [1, 1]} : vector<8x128xf32> to vector<1x128xf32>
    %cst_59 = arith.constant dense<0.000000e+00> : vector<1x128xf32>
    %227 = tpu.matmul %225, %164, %cst_59 {dimension_numbers = #tpu.dot_dimension_numbers<[1], [0], [0], [1], [0, 0, 1, 1], [], []>} : vector<1x32xf32>, vector<32x128xf32>, vector<1x128xf32> -> vector<1x128xf32>
    %228 = arith.addf %226, %227 : vector<1x128xf32>
    %229 = arith.negf %228 : vector<1x128xf32>
    %230 = math.exp %229 : vector<1x128xf32>
    %cst_60 = arith.constant 1.000000e+00 : f32
    %231 = vector.broadcast %cst_60 : f32 to vector<1x128xf32>
    %232 = arith.addf %231, %230 : vector<1x128xf32>
    %233 = arith.divf %231, %232 : vector<1x128xf32>
    %234 = math.tanh %228 : vector<1x128xf32>
    %235 = vector.extract_strided_slice %233 {offsets = [0, 0], sizes = [1, 32], strides = [1, 1]} : vector<1x128xf32> to vector<1x32xf32>
    %236 = vector.extract_strided_slice %233 {offsets = [0, 32], sizes = [1, 32], strides = [1, 1]} : vector<1x128xf32> to vector<1x32xf32>
    %237 = vector.extract_strided_slice %234 {offsets = [0, 64], sizes = [1, 32], strides = [1, 1]} : vector<1x128xf32> to vector<1x32xf32>
    %238 = vector.extract_strided_slice %233 {offsets = [0, 96], sizes = [1, 32], strides = [1, 1]} : vector<1x128xf32> to vector<1x32xf32>
    %239 = arith.mulf %236, %223 : vector<1x32xf32>
    %240 = arith.mulf %235, %237 : vector<1x32xf32>
    %241 = arith.addf %239, %240 : vector<1x32xf32>
    %242 = math.tanh %241 : vector<1x32xf32>
    %243 = arith.mulf %238, %242 : vector<1x32xf32>
    %244 = vector.extract_strided_slice %169 {offsets = [4, 0], sizes = [1, 128], strides = [1, 1]} : vector<8x128xf32> to vector<1x128xf32>
    %cst_61 = arith.constant dense<0.000000e+00> : vector<1x128xf32>
    %245 = tpu.matmul %243, %164, %cst_61 {dimension_numbers = #tpu.dot_dimension_numbers<[1], [0], [0], [1], [0, 0, 1, 1], [], []>} : vector<1x32xf32>, vector<32x128xf32>, vector<1x128xf32> -> vector<1x128xf32>
    %246 = arith.addf %244, %245 : vector<1x128xf32>
    %247 = arith.negf %246 : vector<1x128xf32>
    %248 = math.exp %247 : vector<1x128xf32>
    %cst_62 = arith.constant 1.000000e+00 : f32
    %249 = vector.broadcast %cst_62 : f32 to vector<1x128xf32>
    %250 = arith.addf %249, %248 : vector<1x128xf32>
    %251 = arith.divf %249, %250 : vector<1x128xf32>
    %252 = math.tanh %246 : vector<1x128xf32>
    %253 = vector.extract_strided_slice %251 {offsets = [0, 0], sizes = [1, 32], strides = [1, 1]} : vector<1x128xf32> to vector<1x32xf32>
    %254 = vector.extract_strided_slice %251 {offsets = [0, 32], sizes = [1, 32], strides = [1, 1]} : vector<1x128xf32> to vector<1x32xf32>
    %255 = vector.extract_strided_slice %252 {offsets = [0, 64], sizes = [1, 32], strides = [1, 1]} : vector<1x128xf32> to vector<1x32xf32>
    %256 = vector.extract_strided_slice %251 {offsets = [0, 96], sizes = [1, 32], strides = [1, 1]} : vector<1x128xf32> to vector<1x32xf32>
    %257 = arith.mulf %254, %241 : vector<1x32xf32>
    %258 = arith.mulf %253, %255 : vector<1x32xf32>
    %259 = arith.addf %257, %258 : vector<1x32xf32>
    %260 = math.tanh %259 : vector<1x32xf32>
    %261 = arith.mulf %256, %260 : vector<1x32xf32>
    %262 = vector.extract_strided_slice %169 {offsets = [5, 0], sizes = [1, 128], strides = [1, 1]} : vector<8x128xf32> to vector<1x128xf32>
    %cst_63 = arith.constant dense<0.000000e+00> : vector<1x128xf32>
    %263 = tpu.matmul %261, %164, %cst_63 {dimension_numbers = #tpu.dot_dimension_numbers<[1], [0], [0], [1], [0, 0, 1, 1], [], []>} : vector<1x32xf32>, vector<32x128xf32>, vector<1x128xf32> -> vector<1x128xf32>
    %264 = arith.addf %262, %263 : vector<1x128xf32>
    %265 = arith.negf %264 : vector<1x128xf32>
    %266 = math.exp %265 : vector<1x128xf32>
    %cst_64 = arith.constant 1.000000e+00 : f32
    %267 = vector.broadcast %cst_64 : f32 to vector<1x128xf32>
    %268 = arith.addf %267, %266 : vector<1x128xf32>
    %269 = arith.divf %267, %268 : vector<1x128xf32>
    %270 = math.tanh %264 : vector<1x128xf32>
    %271 = vector.extract_strided_slice %269 {offsets = [0, 0], sizes = [1, 32], strides = [1, 1]} : vector<1x128xf32> to vector<1x32xf32>
    %272 = vector.extract_strided_slice %269 {offsets = [0, 32], sizes = [1, 32], strides = [1, 1]} : vector<1x128xf32> to vector<1x32xf32>
    %273 = vector.extract_strided_slice %270 {offsets = [0, 64], sizes = [1, 32], strides = [1, 1]} : vector<1x128xf32> to vector<1x32xf32>
    %274 = vector.extract_strided_slice %269 {offsets = [0, 96], sizes = [1, 32], strides = [1, 1]} : vector<1x128xf32> to vector<1x32xf32>
    %275 = arith.mulf %272, %259 : vector<1x32xf32>
    %276 = arith.mulf %271, %273 : vector<1x32xf32>
    %277 = arith.addf %275, %276 : vector<1x32xf32>
    %278 = math.tanh %277 : vector<1x32xf32>
    %279 = arith.mulf %274, %278 : vector<1x32xf32>
    %280 = vector.extract_strided_slice %169 {offsets = [6, 0], sizes = [1, 128], strides = [1, 1]} : vector<8x128xf32> to vector<1x128xf32>
    %cst_65 = arith.constant dense<0.000000e+00> : vector<1x128xf32>
    %281 = tpu.matmul %279, %164, %cst_65 {dimension_numbers = #tpu.dot_dimension_numbers<[1], [0], [0], [1], [0, 0, 1, 1], [], []>} : vector<1x32xf32>, vector<32x128xf32>, vector<1x128xf32> -> vector<1x128xf32>
    %282 = arith.addf %280, %281 : vector<1x128xf32>
    %283 = arith.negf %282 : vector<1x128xf32>
    %284 = math.exp %283 : vector<1x128xf32>
    %cst_66 = arith.constant 1.000000e+00 : f32
    %285 = vector.broadcast %cst_66 : f32 to vector<1x128xf32>
    %286 = arith.addf %285, %284 : vector<1x128xf32>
    %287 = arith.divf %285, %286 : vector<1x128xf32>
    %288 = math.tanh %282 : vector<1x128xf32>
    %289 = vector.extract_strided_slice %287 {offsets = [0, 0], sizes = [1, 32], strides = [1, 1]} : vector<1x128xf32> to vector<1x32xf32>
    %290 = vector.extract_strided_slice %287 {offsets = [0, 32], sizes = [1, 32], strides = [1, 1]} : vector<1x128xf32> to vector<1x32xf32>
    %291 = vector.extract_strided_slice %288 {offsets = [0, 64], sizes = [1, 32], strides = [1, 1]} : vector<1x128xf32> to vector<1x32xf32>
    %292 = vector.extract_strided_slice %287 {offsets = [0, 96], sizes = [1, 32], strides = [1, 1]} : vector<1x128xf32> to vector<1x32xf32>
    %293 = arith.mulf %290, %277 : vector<1x32xf32>
    %294 = arith.mulf %289, %291 : vector<1x32xf32>
    %295 = arith.addf %293, %294 : vector<1x32xf32>
    %296 = math.tanh %295 : vector<1x32xf32>
    %297 = arith.mulf %292, %296 : vector<1x32xf32>
    %298 = vector.extract_strided_slice %169 {offsets = [7, 0], sizes = [1, 128], strides = [1, 1]} : vector<8x128xf32> to vector<1x128xf32>
    %cst_67 = arith.constant dense<0.000000e+00> : vector<1x128xf32>
    %299 = tpu.matmul %297, %164, %cst_67 {dimension_numbers = #tpu.dot_dimension_numbers<[1], [0], [0], [1], [0, 0, 1, 1], [], []>} : vector<1x32xf32>, vector<32x128xf32>, vector<1x128xf32> -> vector<1x128xf32>
    %300 = arith.addf %298, %299 : vector<1x128xf32>
    %301 = arith.negf %300 : vector<1x128xf32>
    %302 = math.exp %301 : vector<1x128xf32>
    %cst_68 = arith.constant 1.000000e+00 : f32
    %303 = vector.broadcast %cst_68 : f32 to vector<1x128xf32>
    %304 = arith.addf %303, %302 : vector<1x128xf32>
    %305 = arith.divf %303, %304 : vector<1x128xf32>
    %306 = math.tanh %300 : vector<1x128xf32>
    %307 = vector.extract_strided_slice %305 {offsets = [0, 0], sizes = [1, 32], strides = [1, 1]} : vector<1x128xf32> to vector<1x32xf32>
    %308 = vector.extract_strided_slice %305 {offsets = [0, 32], sizes = [1, 32], strides = [1, 1]} : vector<1x128xf32> to vector<1x32xf32>
    %309 = vector.extract_strided_slice %306 {offsets = [0, 64], sizes = [1, 32], strides = [1, 1]} : vector<1x128xf32> to vector<1x32xf32>
    %310 = vector.extract_strided_slice %305 {offsets = [0, 96], sizes = [1, 32], strides = [1, 1]} : vector<1x128xf32> to vector<1x32xf32>
    %311 = arith.mulf %308, %295 : vector<1x32xf32>
    %312 = arith.mulf %307, %309 : vector<1x32xf32>
    %313 = arith.addf %311, %312 : vector<1x32xf32>
    %314 = math.tanh %313 : vector<1x32xf32>
    %315 = arith.mulf %310, %314 : vector<1x32xf32>
    %c1_69 = arith.constant 1 : index
    %c0_70 = arith.constant 0 : index
    %316 = vector.load %arg12[%c1_69, %c0_70] : memref<2x32xf32, #tpu.memory_space<vmem>>, vector<1x32xf32>
    tpu.vector_store %arg12[%c1_69, %c0_70], %315 {strides = array<i32>} : memref<2x32xf32, #tpu.memory_space<vmem>>, vector<1x32xf32>,
    %c1_71 = arith.constant 1 : index
    %c0_72 = arith.constant 0 : index
    %317 = vector.load %arg13[%c1_71, %c0_72] : memref<2x32xf32, #tpu.memory_space<vmem>>, vector<1x32xf32>
    tpu.vector_store %arg13[%c1_71, %c0_72], %313 {strides = array<i32>} : memref<2x32xf32, #tpu.memory_space<vmem>>, vector<1x32xf32>,
    %c0_73 = arith.constant 0 : index
    %c0_74 = arith.constant 0 : index
    %318 = vector.load %arg9[%c0_73, %c0_74] : memref<32x4xf32, #tpu.memory_space<vmem>>, vector<32x4xf32>
    %cst_75 = arith.constant dense<0.000000e+00> : vector<1x4xf32>
    %319 = tpu.matmul %315, %318, %cst_75 {dimension_numbers = #tpu.dot_dimension_numbers<[1], [0], [0], [1], [0, 0, 1, 1], [], []>} : vector<1x32xf32>, vector<32x4xf32>, vector<1x4xf32> -> vector<1x4xf32>
    %c0_76 = arith.constant 0 : index
    %c0_77 = arith.constant 0 : index
    %320 = vector.load %arg10[%c0_76, %c0_77] : memref<1x4xf32, #tpu.memory_space<vmem>>, vector<1x4xf32>
    %321 = arith.addf %319, %320 : vector<1x4xf32>
    %c0_78 = arith.constant 0 : index
    %c0_79 = arith.constant 0 : index
    %322 = vector.load %arg11[%c0_78, %c0_79] : memref<1x4xf32, #tpu.memory_space<vmem>>, vector<1x4xf32>
    tpu.vector_store %arg11[%c0_78, %c0_79], %321 {strides = array<i32>} : memref<1x4xf32, #tpu.memory_space<vmem>>, vector<1x4xf32>,
    return
  }
}

</mosaic_0001>

<bundles_post_ra>
// kernel: lstm_forward.1
= control target key start
LH: loop header
LB: loop body
LE: loop exit
PB: predicated region body
PF: predicated region fallthrough
CT: control target
= control target key end

     0   :  { %19 = vsyncpa [#allocation4], 0  ;;  %s3432_s0 = inlined_call_operand.hbm [shape: f32[8,16], index: 0, kind: input, shape index: {}]   ;;  %s3433_s1 = inlined_call_operand.vmem [shape: f32[2,32], index: 1, kind: input, shape index: {}]   ;;  %s3434_s2 = inlined_call_operand.hbm [shape: f32[2,32], index: 2, kind: input, shape index: {}]   ;;  %s3435_s3 = inlined_call_operand.vmem [shape: f32[16,128], index: 3, kind: input, shape index: {}]   ;;  %s3436_s4 = inlined_call_operand.vmem [shape: f32[32,128], index: 4, kind: input, shape index: {}]   ;;  %s3437_s5 = inlined_call_operand.hbm [shape: f32[1,128], index: 5, kind: input, shape index: {}]   ;;  %s3438_s6 = inlined_call_operand.hbm [shape: f32[32,128], index: 6, kind: input, shape index: {}]   ;;  %s3439_s7 = inlined_call_operand.hbm [shape: f32[32,128], index: 7, kind: input, shape index: {}]   ;;  %s3440_s8 = inlined_call_operand.vmem [shape: f32[1,128], index: 8, kind: input, shape index: {}]   ;;  %s3441_s9 = inlined_call_operand.vmem [shape: f32[32,4], index: 9, kind: input, shape index: {}]   ;;  %s3442_s10 = inlined_call_operand.vmem [shape: f32[1,4], index: 10, kind: input, shape index: {}]   ;;  %s3443_s11 = inlined_call_operand.hbm [shape: f32[1,4], index: 11, kind: output, shape index: {0}]   ;;  %s3444_s12 = inlined_call_operand.hbm [shape: f32[2,32], index: 12, kind: output, shape index: {1}]   ;;  %s3445_s13 = inlined_call_operand.hbm [shape: f32[2,32], index: 13, kind: output, shape index: {2}]  }
   0x1   :  { %20 = vsyncpa [#allocation7], 0 }
   0x2   :  { %21 = vsyncpa [#allocation10], 0 }
   0x3   :  { %22 = vsyncpa [#allocation5], 0 }
   0x4   :  { %23 = vsyncpa [#allocation14], 0  ;;  %s2944_s25 = smov [#allocation6]   ;;  %s2945_s27 = smov [#allocation9]  }
   0x5   :  { %s42_s26 = sshll.u32 %s2944_s25, 4  ;;  %s65_s28 = sshll.u32 %s2945_s27, 4  ;;  %s43_s26 = int_to_ptr.vmem [resolvable:$true] %s42_s26  ;;  %s3030_s28 = int_to_ptr.vmem [resolvable:$true] %s65_s28 }
   0x6   :  { %s2758_s14 = scalar_lea.hbm %s3434_s2, 32 }
   0x7   :  { %p2759_p0 = scmp.ne.s32.totalorder %s3434_s2, %s2758_s14  ;;  %p2762_p1 = scmp.lt.u32.totalorder %s2758_s14, %s3434_s2 }
   0x9   :  { %p2764_p2 = pnand %p2762_p1, %p2759_p0 }
   0xb   :  { %2767 = shalt.err (!%p2764_p2)
}
   0xc   :  { %s2768_s19 = scalar_lea.vmem %s43_s26, 32  ;;  %p2773_p4 = scmp.lt.s32.totalorder %s43_s26, %s43_s26 }
   0xd   :  { %p2769_p3 = scmp.ne.s32.totalorder %s43_s26, %s2768_s19  ;;  %p2774_p5 = scmp.lt.s32.totalorder %s2768_s19, %s2768_s19 }
   0xf   :  { %p2775_p6 = por %p2774_p5, %p2773_p4 }
  0x11   :  { %p2776_p7 = pnand %p2775_p6, %p2769_p3 }
  0x13   :  { %2779 = shalt.err (!%p2776_p7)
}
  0x14   :  { %45 = dma.hbm_to_vmem [thread:$0]  %s3434_s2, 32, %s43_s26, [#allocation7]  }
  0x15   :  { %s2780_s24 = scalar_lea.hbm %s3438_s6, 512 }
  0x16   :  { %p2781_p8 = scmp.ne.s32.totalorder %s3438_s6, %s2780_s24  ;;  %p2784_p9 = scmp.lt.u32.totalorder %s2780_s24, %s3438_s6 }
  0x18   :  { %p2786_p10 = pnand %p2784_p9, %p2781_p8 }
  0x1a   :  { %2789 = shalt.err (!%p2786_p10)
}
  0x1b   :  { %s2790_s14 = scalar_lea.vmem %s3030_s28, 512  ;;  %p2795_p12 = scmp.lt.s32.totalorder %s3030_s28, %s3030_s28 }
  0x1c   :  { %p2791_p11 = scmp.ne.s32.totalorder %s3030_s28, %s2790_s14  ;;  %p2796_p13 = scmp.lt.s32.totalorder %s2790_s14, %s2790_s14 }
  0x1e   :  { %p2797_p0 = por %p2796_p13, %p2795_p12 }
  0x20   :  { %p2798_p1 = pnand %p2797_p0, %p2791_p11 }
  0x22   :  { %2801 = shalt.err (!%p2798_p1)
}
  0x23   :  { %s2946_s2 = smov 128   ;;  %s2947_s26 = smov 8  }
  0x24   :  { %71 = dma.hbm_to_vmem [thread:$0]  %s3438_s6, 512, %s3030_s28, [#allocation10], %s2946_s2, %s2946_s2, %s2947_s26  }
  0x25   :  { %s2948_s17 = smov [#allocation3]   ;;  %s2949_s19 = smov [#allocation8]  }
  0x26   :  { %s30_s18 = sshll.u32 %s2948_s17, 4  ;;  %s56_s20 = sshll.u32 %s2949_s19, 4  ;;  %s31_s18 = int_to_ptr.vmem [resolvable:$true] %s30_s18  ;;  %s57_s20 = int_to_ptr.vmem [resolvable:$true] %s56_s20 }
  0x27   :  { %s2802_s23 = scalar_lea.hbm %s3432_s0, 128 }
  0x28   :  { %p2803_p2 = scmp.ne.s32.totalorder %s3432_s0, %s2802_s23  ;;  %p2806_p3 = scmp.lt.u32.totalorder %s2802_s23, %s3432_s0 }
  0x2a   :  { %p2808_p4 = pnand %p2806_p3, %p2803_p2 }
  0x2c   :  { %2811 = shalt.err (!%p2808_p4)
}
  0x2d   :  { %s2812_s6 = scalar_lea.vmem %s31_s18, 128  ;;  %p2817_p6 = scmp.lt.s32.totalorder %s31_s18, %s31_s18 }
  0x2e   :  { %p2813_p5 = scmp.ne.s32.totalorder %s31_s18, %s2812_s6  ;;  %p2818_p7 = scmp.lt.s32.totalorder %s2812_s6, %s2812_s6 }
  0x30   :  { %p2819_p8 = por %p2818_p7, %p2817_p6 }
  0x32   :  { %p2820_p9 = pnand %p2819_p8, %p2813_p5 }
  0x34   :  { %2823 = shalt.err (!%p2820_p9)
}
  0x35   :  { %33 = dma.hbm_to_vmem [thread:$0]  %s3432_s0, 128, %s31_s18, [#allocation4]  }
  0x36   :  { %s2824_s16 = scalar_lea.hbm %s3437_s5, 16 }
  0x37   :  { %p2825_p10 = scmp.ne.s32.totalorder %s3437_s5, %s2824_s16  ;;  %p2828_p11 = scmp.lt.u32.totalorder %s2824_s16, %s3437_s5 }
  0x39   :  { %p2830_p12 = pnand %p2828_p11, %p2825_p10 }
  0x3b   :  { %2833 = shalt.err (!%p2830_p12)
}
  0x3c   :  { %s2834_s23 = scalar_lea.vmem %s57_s20, 16  ;;  %s2838_s24 = scalar_lea.vmem %s57_s20, 32 }
  0x3d   :  { %p2835_p13 = scmp.ne.s32.totalorder %s57_s20, %s2834_s23  ;;  %p2839_p0 = scmp.lt.s32.totalorder %s57_s20, %s57_s20 }
  0x3e   :  { %p2840_p1 = scmp.lt.s32.totalorder %s2838_s24, %s2834_s23 }
  0x40   :  { %p2841_p2 = por %p2840_p1, %p2839_p0 }
  0x42   :  { %p2842_p3 = pnand %p2841_p2, %p2835_p13 }
  0x44   :  { %2845 = shalt.err (!%p2842_p3)
}
  0x45   :  { %59 = dma.hbm_to_vmem [thread:$0]  %s3437_s5, 16, %s57_s20, [#allocation7]  }
  0x46   :  { %s2950_s25 = smov [#allocation11]   ;;  %s2846_s28 = scalar_lea.hbm %s3439_s7, 512 }
  0x47   :  { %s77_s27 = sshll.u32 %s2950_s25, 4  ;;  %p2847_p4 = scmp.ne.s32.totalorder %s3439_s7, %s2846_s28  ;;  %s78_s27 = int_to_ptr.vmem [resolvable:$true] %s77_s27 }
  0x48   :  { %p2850_p5 = scmp.lt.u32.totalorder %s2846_s28, %s3439_s7 }
  0x4a   :  { %p2852_p6 = pnand %p2850_p5, %p2847_p4 }
  0x4c   :  { %2855 = shalt.err (!%p2852_p6)
}
  0x4d   :  { %s2856_s17 = scalar_lea.vmem %s78_s27, 512  ;;  %p2861_p8 = scmp.lt.s32.totalorder %s78_s27, %s78_s27 }
  0x4e   :  { %p2857_p7 = scmp.ne.s32.totalorder %s78_s27, %s2856_s17  ;;  %p2862_p9 = scmp.lt.s32.totalorder %s2856_s17, %s2856_s17 }
  0x50   :  { %p2863_p10 = por %p2862_p9, %p2861_p8 }
  0x52   :  { %p2864_p11 = pnand %p2863_p10, %p2857_p7 }
  0x54   :  { %2867 = shalt.err (!%p2864_p11)
}
  0x55   :  { %83 = dma.hbm_to_vmem [thread:$0]  %s3439_s7, 512, %s78_s27, [#allocation10], %s2946_s2, %s2946_s2, %s2947_s26  }
  0x56   :  { %2934 = dma.done.wait [#allocation4], 128  }
  0x57   :  { %2935 = vsyncadd [#allocation4], 4294967168 }
  0x58   :  { %2936 = dma.done.wait [#allocation7], 48  }
  0x59   :  { %2937 = vsyncadd [#allocation7], 4294967248 }
  0x5a   :  { %2938 = dma.done.wait [#allocation10], 1024  }
  0x5b   :  { %2939 = vsyncadd [#allocation10], 4294966272  ;;  %v2951_v0 = vmov 0.0|0.0   ;;  %vm2952_vm0 = vmmov 0   ;;  %v2953_v1 = vmov 0.0   ;;  %v107_v2 = vld [vmem:[%s3436_s4] sm:$0xff] }
  0x5c   :  { %2506 = vmatprep.subr.bf16.mxu1 %v2951_v0  ;;  %2503 = vmatprep.subr.bf16.mxu0 %v2951_v0  ;;  %v108_v3 = vld [vmem:[%s3436_s4 + $0x8] sm:$0xff]  ;;  %v105_v4 = vld [vmem:[%s3435_s3] sm:$0xff]  ;;  %v109_v7 = vld [vmem:[%s3436_s4 + $0x10] sm:$0xff]  ;;  %vm119_vm1 = vcmask 130048   ;;  %vm195_vm2 = vcmask 261120   ;;  %s2955_s6 = smov 32  }
  0x5d   :  { %2302 = vmatprep.mubr.msk.f32.mxu0 %vm2952_vm0, %v2953_v1  ;;  %2313 = vmatprep.mubr.msk.f32.mxu1 %vm2952_vm0, %v2953_v1  ;;  %v3118_v5 = vpack.c.bf16 %v108_v3, %v107_v2  ;;  %v106_v6 = vld [vmem:[%s3435_s3 + $0x8] sm:$0xff]  ;;  %v110_v9 = vld [vmem:[%s3436_s4 + $0x18] sm:$0xff]  ;;  %v193_v12 = vld [vmem:[%s3433_s1] sm:$0x1]  ;;  %s2954_s4 = smov 64   ;;  %vm302_vm3 = vcmask 253952  }
  0x5e   :  { %v2504_v8 = vpack.c.bf16 %v106_v6, %v105_v4  ;;  %v3130_v10 = vpack.c.bf16 %v110_v9, %v109_v7  ;;  %v112_v11 = vld [vmem:[#allocation3] sm:$0xff]  ;;  %v2168_v13 = vld [vmem:[#allocation8] ss:$0 sm:$0xff]  ;;  %v194_v21 = vld [vmem:[#allocation6] sm:$0x1]  ;;  %vm411_vm4 = vcmask 254977  }
  0x5f   :  { %2508 = vmatpush3.bf16.msra.mxu1 %v3118_v5  ;;  %vm635_vm5 = vcmask 257027   ;;  %vm859_vm6 = vcmask 259077   ;;  %vm523_vm7 = vcmask 256002   ;;  %vm747_vm8 = vcmask 258052   ;;  %s2956_s26 = smov 96  }
  0x60   :  { %2505 = vmatpush3.bf16.msra.mxu0 %v2504_v8  ;;  %2509 = vmatprep.subr.bf16.mxu1 %v2951_v0  ;;  %vm971_vm9 = vcmask 260102   ;;  %vm1083_vm10 = vcmask 261127  }
  0x61   :  { %2512 = vmatprep.subr.bf16.mxu0 %v2951_v0 }
  0x63   :  { %2303 = vmatmul.mubr.msk.f32.vlgmr.msra.gmra.mrb[0].mxu0 %vm119_vm1, %v112_v11  ;;  %2511 = vmatpush3.bf16.msra.mxu1 %v3130_v10 }
  0x64   :  { %2514 = vmatpush3.bf16.msra.mxu0 %v3118_v5  ;;  %2324 = vmatprep.mubr.msk.f32.mxu0 %vm2952_vm0, %v2953_v1 }
  0x65   :  { %2515 = vmatprep.subr.bf16.mxu0 %v2951_v0  ;;  %2518 = vmatprep.subr.bf16.mxu1 %v2951_v0 }
  0x66   :  { %2314 = vmatmul.mubr.msk.f32.vlgmr.msra.gmra.mrb[0].mxu1 %vm195_vm2, %v193_v12 }
  0x67   :  { %2520 = vmatpush3.bf16.msra.mxu1 %v3118_v5  ;;  %2335 = vmatprep.mubr.msk.f32.mxu1 %vm2952_vm0, %v2953_v1 }
  0x68   :  { %2517 = vmatpush3.bf16.msra.mxu0 %v3130_v10  ;;  %2521 = vmatprep.subr.bf16.mxu1 %v2951_v0 }
  0x69   :  { %2524 = vmatprep.subr.bf16.mxu0 %v2951_v0 }
  0x6b   :  { %2523 = vmatpush3.bf16.msra.mxu1 %v3130_v10 }
  0x6c   :  { %2530 = vmatprep.subr.bf16.mxu1 %v2951_v0 }
 0x136   :  { %v189_v14 = vpop.f32.mrb[0].mxu0 }
 0x137   :  { %v3152_v15 = vadd.f32 %v2168_v13, %v189_v14  ;;  %v2304_v16 = vpop.f32.mrb[1].mxu0 }
 0x139   :  { %v265_v17 = vpop.f32.mrb[0].mxu1 }
 0x13a   :  { %v269_v18 = vadd.f32 %v265_v17, %v3152_v15  ;;  %v2315_v19 = vpop.f32.mrb[1].mxu1 }
 0x13c   :  { %2630 = vtanh.f32 %v269_v18  ;;  %v2171_v22 = vmul.f32 -1.442695, %v269_v18 }
 0x13e   :  { %2632 = vpow2.f32 %v2171_v22 }
 0x146   :  { %v2631_v20 = vpop.eup %2630 }
 0x147   :  { %283 = vrot.lane.b32.xlu0 %v2631_v20, %s2954_s4 }
 0x148   :  { %v2633_v23 = vpop.eup %2632 }
 0x149   :  { %v273_v24 = vadd.f32 1.0, %v2633_v23 }
 0x14b   :  { %278 = vrot.lane.b32.xlu0 %v194_v21, %s2955_s6  ;;  %2634 = vrcp.f32 %v273_v24 }
 0x155   :  { %v2635_v25 = vpop.eup %2634 }
 0x1b9   :  { %v284_v26 = vpop.permute.xlu0 %283 }
 0x1ba   :  { %v286_v27 = vmul.f32 %v2635_v25, %v284_v26 }
 0x1bc   :  { %288 = vrot.lane.b32.xlu1 %v286_v27, %s2955_s6 }
 0x1bd   :  { %v279_v28 = vpop.permute.xlu0 %278 }
 0x1be   :  { %v281_v29 = vmul.f32 %v2635_v25, %v279_v28 }
 0x22e   :  { %v289_v30 = vpop.permute.xlu1 %288 }
 0x22f   :  { %v291_v31 = vadd.f32 %v289_v30, %v281_v29 }
 0x231   :  { %2636 = vtanh.f32 %v291_v31  ;;  %v388_v47 = vrot.slane %v291_v31, 7 }
 0x23b   :  { %v2637_v32 = vpop.eup %2636 }
 0x23c   :  { %294 = vrot.lane.b32.xlu1 %v2637_v32, %s2954_s4 }
 0x2ae   :  { %v295_v33 = vpop.permute.xlu1 %294 }
 0x2af   :  { %v297_v34 = vmul.f32 %v2635_v25, %v295_v33 }
 0x2b1   :  { %299 = vrot.lane.b32.xlu0 %v297_v34, %s2955_s6 }
 0x323   :  { %v300_v35 = vpop.permute.xlu0 %299 }
 0x324   :  { %303 = vst.msk [vmem:[#allocation2] sm:$0x1] %vm302_vm3, %v300_v35  ;;  %2325 = vmatmul.mubr.msk.f32.vlgmr.msra.gmra.mrb[2].mxu0 %vm195_vm2, %v300_v35 }
 0x325   :  { %2526 = vmatpush3.bf16.msra.mxu0 %v3118_v5  ;;  %2346 = vmatprep.mubr.msk.f32.mxu0 %vm2952_vm0, %v2953_v1 }
 0x326   :  { %2527 = vmatprep.subr.bf16.mxu0 %v2951_v0 }
 0x329   :  { %2529 = vmatpush3.bf16.msra.mxu0 %v3130_v10 }
 0x32a   :  { %2536 = vmatprep.subr.bf16.mxu0 %v2951_v0 }
 0x3f7   :  { %v372_v36 = vpop.f32.mrb[2].mxu0 }
 0x3f8   :  { %v377_v37 = vrot.slane %v372_v36, 7  ;;  %v2326_v38 = vpop.f32.mrb[3].mxu0 }
 0x3fa   :  { %v379_v39 = vadd.f32 %v377_v37, %v3152_v15 }
 0x3fc   :  { %2638 = vtanh.f32 %v379_v39  ;;  %v2173_v41 = vmul.f32 -1.442695, %v379_v39 }
 0x3fe   :  { %2640 = vpow2.f32 %v2173_v41 }
 0x406   :  { %v2639_v40 = vpop.eup %2638 }
 0x407   :  { %392 = vrot.lane.b32.xlu1 %v2639_v40, %s2954_s4 }
 0x408   :  { %v2641_v42 = vpop.eup %2640 }
 0x409   :  { %v383_v43 = vadd.f32 1.0, %v2641_v42 }
 0x40b   :  { %2642 = vrcp.f32 %v383_v43 }
 0x415   :  { %v2643_v44 = vpop.eup %2642 }
 0x416   :  { %v390_v48 = vmul.f32 %v2643_v44, %v388_v47 }
 0x479   :  { %v393_v45 = vpop.permute.xlu1 %392 }
 0x47a   :  { %v395_v46 = vmul.f32 %v2643_v44, %v393_v45 }
 0x47c   :  { %397 = vrot.lane.b32.xlu0 %v395_v46, %s2955_s6 }
 0x4ee   :  { %v398_v49 = vpop.permute.xlu0 %397 }
 0x4ef   :  { %v400_v50 = vadd.f32 %v398_v49, %v390_v48 }
 0x4f1   :  { %2644 = vtanh.f32 %v400_v50  ;;  %v500_v6 = vrot.slane %v400_v50, 7 }
 0x4fb   :  { %v2645_v51 = vpop.eup %2644 }
 0x4fc   :  { %403 = vrot.lane.b32.xlu1 %v2645_v51, %s2954_s4 }
 0x56e   :  { %v404_v52 = vpop.permute.xlu1 %403 }
 0x56f   :  { %v3171_v53 = vmul.f32 %v2643_v44, %v404_v52 }
 0x571   :  { %v413_v54 = vrot.slane %v3171_v53, 1 }
 0x573   :  { %414 = vrot.lane.b32.xlu0 %v413_v54, %s2955_s6 }
 0x5e5   :  { %v415_v55 = vpop.permute.xlu0 %414 }
 0x5e6   :  { %2336 = vmatmul.mubr.msk.f32.vlgmr.msra.gmra.mrb[2].mxu1 %vm195_vm2, %v415_v55 }
 0x5e7   :  { %2532 = vmatpush3.bf16.msra.mxu1 %v3118_v5  ;;  %2357 = vmatprep.mubr.msk.f32.mxu1 %vm2952_vm0, %v2953_v1 }
 0x5e8   :  { %2533 = vmatprep.subr.bf16.mxu1 %v2951_v0 }
 0x5eb   :  { %2535 = vmatpush3.bf16.msra.mxu1 %v3130_v10 }
 0x5ec   :  { %2542 = vmatprep.subr.bf16.mxu1 %v2951_v0 }
 0x6b9   :  { %v484_v56 = vpop.f32.mrb[2].mxu1 }
 0x6ba   :  { %v489_v57 = vrot.slane %v484_v56, 6  ;;  %v2337_v58 = vpop.f32.mrb[3].mxu1 }
 0x6bc   :  { %v491_v59 = vadd.f32 %v489_v57, %v3152_v15 }
 0x6be   :  { %2646 = vtanh.f32 %v491_v59  ;;  %v2175_v61 = vmul.f32 -1.442695, %v491_v59 }
 0x6c0   :  { %2648 = vpow2.f32 %v2175_v61 }
 0x6c8   :  { %v2647_v60 = vpop.eup %2646 }
 0x6c9   :  { %504 = vrot.lane.b32.xlu1 %v2647_v60, %s2954_s4 }
 0x6ca   :  { %v2649_v62 = vpop.eup %2648 }
 0x6cb   :  { %v495_v63 = vadd.f32 1.0, %v2649_v62 }
 0x6cd   :  { %2650 = vrcp.f32 %v495_v63 }
 0x6d7   :  { %v2651_v2 = vpop.eup %2650 }
 0x6d8   :  { %v502_v7 = vmul.f32 %v2651_v2, %v500_v6 }
 0x73b   :  { %v505_v3 = vpop.permute.xlu1 %504 }
 0x73c   :  { %v507_v4 = vmul.f32 %v2651_v2, %v505_v3 }
 0x73e   :  { %509 = vrot.lane.b32.xlu0 %v507_v4, %s2955_s6 }
 0x7b0   :  { %v510_v8 = vpop.permute.xlu0 %509 }
 0x7b1   :  { %v512_v9 = vadd.f32 %v510_v8, %v502_v7 }
 0x7b3   :  { %2652 = vtanh.f32 %v512_v9  ;;  %v612_v28 = vrot.slane %v512_v9, 7 }
 0x7bd   :  { %v2653_v11 = vpop.eup %2652 }
 0x7be   :  { %515 = vrot.lane.b32.xlu1 %v2653_v11, %s2954_s4 }
 0x830   :  { %v516_v12 = vpop.permute.xlu1 %515 }
 0x831   :  { %v3186_v13 = vmul.f32 %v2651_v2, %v516_v12 }
 0x833   :  { %v525_v14 = vrot.slane %v3186_v13, 2 }
 0x835   :  { %526 = vrot.lane.b32.xlu0 %v525_v14, %s2955_s6 }
 0x8a7   :  { %v527_v16 = vpop.permute.xlu0 %526 }
 0x8a8   :  { %2347 = vmatmul.mubr.msk.f32.vlgmr.msra.gmra.mrb[4].mxu0 %vm195_vm2, %v527_v16 }
 0x8a9   :  { %2538 = vmatpush3.bf16.msra.mxu0 %v3118_v5  ;;  %2368 = vmatprep.mubr.msk.f32.mxu0 %vm2952_vm0, %v2953_v1 }
 0x8aa   :  { %2539 = vmatprep.subr.bf16.mxu0 %v2951_v0 }
 0x8ad   :  { %2541 = vmatpush3.bf16.msra.mxu0 %v3130_v10 }
 0x8ae   :  { %2548 = vmatprep.subr.bf16.mxu0 %v2951_v0 }
 0x97b   :  { %v596_v17 = vpop.f32.mrb[4].mxu0 }
 0x97c   :  { %v601_v18 = vrot.slane %v596_v17, 5  ;;  %v2348_v19 = vpop.f32.mrb[5].mxu0 }
 0x97e   :  { %v603_v20 = vadd.f32 %v601_v18, %v3152_v15 }
 0x980   :  { %2654 = vtanh.f32 %v603_v20  ;;  %v2177_v22 = vmul.f32 -1.442695, %v603_v20 }
 0x982   :  { %2656 = vpow2.f32 %v2177_v22 }
 0x98a   :  { %v2655_v21 = vpop.eup %2654 }
 0x98b   :  { %616 = vrot.lane.b32.xlu1 %v2655_v21, %s2954_s4 }
 0x98c   :  { %v2657_v23 = vpop.eup %2656 }
 0x98d   :  { %v607_v24 = vadd.f32 1.0, %v2657_v23 }
 0x98f   :  { %2658 = vrcp.f32 %v607_v24 }
 0x999   :  { %v2659_v25 = vpop.eup %2658 }
 0x99a   :  { %v614_v29 = vmul.f32 %v2659_v25, %v612_v28 }
 0x9fd   :  { %v617_v26 = vpop.permute.xlu1 %616 }
 0x9fe   :  { %v619_v27 = vmul.f32 %v2659_v25, %v617_v26 }
 0xa00   :  { %621 = vrot.lane.b32.xlu0 %v619_v27, %s2955_s6 }
 0xa72   :  { %v622_v30 = vpop.permute.xlu0 %621 }
 0xa73   :  { %v624_v31 = vadd.f32 %v622_v30, %v614_v29 }
 0xa75   :  { %2660 = vtanh.f32 %v624_v31  ;;  %v724_v48 = vrot.slane %v624_v31, 7 }
 0xa7f   :  { %v2661_v32 = vpop.eup %2660 }
 0xa80   :  { %627 = vrot.lane.b32.xlu1 %v2661_v32, %s2954_s4 }
 0xaf2   :  { %v628_v33 = vpop.permute.xlu1 %627 }
 0xaf3   :  { %v3201_v34 = vmul.f32 %v2659_v25, %v628_v33 }
 0xaf5   :  { %v637_v35 = vrot.slane %v3201_v34, 3 }
 0xaf7   :  { %638 = vrot.lane.b32.xlu0 %v637_v35, %s2955_s6 }
 0xb69   :  { %v639_v36 = vpop.permute.xlu0 %638 }
 0xb6a   :  { %2358 = vmatmul.mubr.msk.f32.vlgmr.msra.gmra.mrb[4].mxu1 %vm195_vm2, %v639_v36 }
 0xb6b   :  { %2544 = vmatpush3.bf16.msra.mxu1 %v3118_v5  ;;  %2379 = vmatprep.mubr.msk.f32.mxu1 %vm2952_vm0, %v2953_v1 }
 0xb6c   :  { %2545 = vmatprep.subr.bf16.mxu1 %v2951_v0 }
 0xb6f   :  { %2547 = vmatpush3.bf16.msra.mxu1 %v3130_v10 }
 0xb70   :  { %2554 = vmatprep.subr.bf16.mxu1 %v2951_v0 }
 0xc3d   :  { %v708_v37 = vpop.f32.mrb[4].mxu1 }
 0xc3e   :  { %v713_v38 = vrot.slane %v708_v37, 4  ;;  %v2359_v39 = vpop.f32.mrb[5].mxu1 }
 0xc40   :  { %v715_v40 = vadd.f32 %v713_v38, %v3152_v15 }
 0xc42   :  { %2662 = vtanh.f32 %v715_v40  ;;  %v2179_v42 = vmul.f32 -1.442695, %v715_v40 }
 0xc44   :  { %2664 = vpow2.f32 %v2179_v42 }
 0xc4c   :  { %v2663_v41 = vpop.eup %2662 }
 0xc4d   :  { %728 = vrot.lane.b32.xlu1 %v2663_v41, %s2954_s4 }
 0xc4e   :  { %v2665_v43 = vpop.eup %2664 }
 0xc4f   :  { %v719_v44 = vadd.f32 1.0, %v2665_v43 }
 0xc51   :  { %2666 = vrcp.f32 %v719_v44 }
 0xc5b   :  { %v2667_v45 = vpop.eup %2666 }
 0xc5c   :  { %v726_v49 = vmul.f32 %v2667_v45, %v724_v48 }
 0xcbf   :  { %v729_v46 = vpop.permute.xlu1 %728 }
 0xcc0   :  { %v731_v47 = vmul.f32 %v2667_v45, %v729_v46 }
 0xcc2   :  { %733 = vrot.lane.b32.xlu0 %v731_v47, %s2955_s6 }
 0xd34   :  { %v734_v50 = vpop.permute.xlu0 %733 }
 0xd35   :  { %v736_v51 = vadd.f32 %v734_v50, %v726_v49 }
 0xd37   :  { %2668 = vtanh.f32 %v736_v51 }
 0xd41   :  { %v2669_v52 = vpop.eup %2668 }
 0xd42   :  { %739 = vrot.lane.b32.xlu1 %v2669_v52, %s2954_s4 }
 0xdb4   :  { %v740_v54 = vpop.permute.xlu1 %739 }
 0xdb5   :  { %v3216_v55 = vmul.f32 %v2667_v45, %v740_v54 }
 0xdb7   :  { %v749_v56 = vrot.slane %v3216_v55, 4 }
 0xdb9   :  { %750 = vrot.lane.b32.xlu0 %v749_v56, %s2955_s6 }
 0xe2b   :  { %v751_v57 = vpop.permute.xlu0 %750 }
 0xe2c   :  { %2369 = vmatmul.mubr.msk.f32.vlgmr.msra.gmra.mrb[6].mxu0 %vm195_vm2, %v751_v57 }
 0xe2d   :  { %2550 = vmatpush3.bf16.msra.mxu0 %v3118_v5  ;;  %2390 = vmatprep.mubr.msk.f32.mxu0 %vm2952_vm0, %v2953_v1 }
 0xe2e   :  { %2551 = vmatprep.subr.bf16.mxu0 %v2951_v0 }
 0xe31   :  { %2553 = vmatpush3.bf16.msra.mxu0 %v3130_v10  ;;  %v836_v10 = vrot.slane %v736_v51, 7 }
 0xe32   :  { %2560 = vmatprep.subr.bf16.mxu0 %v2951_v0 }
 0xeff   :  { %v820_v58 = vpop.f32.mrb[6].mxu0 }
 0xf00   :  { %v825_v59 = vrot.slane %v820_v58, 3  ;;  %v2370_v60 = vpop.f32.mrb[7].mxu0  ;;  %v1092_v58 = vld [vmem:[#allocation9 + $0x8] sm:$0xff] }
 0xf01   :  { %v1095_v60 = vld [vmem:[#allocation11] sm:$0xff] }
 0xf02   :  { %v827_v61 = vadd.f32 %v825_v59, %v3152_v15 }
 0xf04   :  { %2670 = vtanh.f32 %v827_v61  ;;  %v2181_v63 = vmul.f32 -1.442695, %v827_v61  ;;  %v1096_v61 = vld [vmem:[#allocation11 + $0x8] sm:$0xff] }
 0xf06   :  { %2672 = vpow2.f32 %v2181_v63  ;;  %v1093_v63 = vld [vmem:[#allocation9 + $0x10] sm:$0xff] }
 0xf0e   :  { %v2671_v62 = vpop.eup %2670 }
 0xf0f   :  { %840 = vrot.lane.b32.xlu1 %v2671_v62, %s2954_s4  ;;  %v3260_v62 = vpack.c.bf16 %v1096_v61, %v1095_v60 }
 0xf10   :  { %v2673_v5 = vpop.eup %2672 }
 0xf11   :  { %v831_v2 = vadd.f32 1.0, %v2673_v5  ;;  %v1094_v5 = vld [vmem:[#allocation9 + $0x18] sm:$0xff] }
 0xf13   :  { %2674 = vrcp.f32 %v831_v2  ;;  %v1097_v2 = vld [vmem:[#allocation11 + $0x10] sm:$0xff] }
 0xf1d   :  { %v2675_v3 = vpop.eup %2674 }
 0xf1e   :  { %v838_v7 = vmul.f32 %v2675_v3, %v836_v10 }
 0xf81   :  { %v841_v4 = vpop.permute.xlu1 %840 }
 0xf82   :  { %v843_v6 = vmul.f32 %v2675_v3, %v841_v4  ;;  %v1098_v4 = vld [vmem:[#allocation11 + $0x18] sm:$0xff] }
 0xf84   :  { %845 = vrot.lane.b32.xlu0 %v843_v6, %s2955_s6 }
 0xff6   :  { %v846_v8 = vpop.permute.xlu0 %845 }
 0xff7   :  { %v848_v9 = vadd.f32 %v846_v8, %v838_v7  ;;  %v1181_v8 = vld [vmem:[#allocation6 + $0x1] sm:$0x1] }
 0xff9   :  { %2676 = vtanh.f32 %v848_v9  ;;  %v948_v29 = vrot.slane %v848_v9, 7 }
0x1003   :  { %v2677_v11 = vpop.eup %2676 }
0x1004   :  { %851 = vrot.lane.b32.xlu1 %v2677_v11, %s2954_s4 }
0x1076   :  { %v852_v12 = vpop.permute.xlu1 %851 }
0x1077   :  { %v854_v14 = vmul.f32 %v2675_v3, %v852_v12  ;;  %v2558_v3 = vpack.c.bf16 %v1094_v5, %v1093_v63 }
0x1079   :  { %v861_v16 = vrot.slane %v854_v14, 5 }
0x107b   :  { %862 = vrot.lane.b32.xlu0 %v861_v16, %s2955_s6 }
0x10ed   :  { %v863_v17 = vpop.permute.xlu0 %862 }
0x10ee   :  { %2380 = vmatmul.mubr.msk.f32.vlgmr.msra.gmra.mrb[6].mxu1 %vm195_vm2, %v863_v17 }
0x10ef   :  { %2401 = vmatprep.mubr.msk.f32.mxu1 %vm2952_vm0, %v2953_v1 }
0x11c1   :  { %v932_v18 = vpop.f32.mrb[6].mxu1 }
0x11c2   :  { %v937_v19 = vrot.slane %v932_v18, 2  ;;  %v2381_v20 = vpop.f32.mrb[7].mxu1  ;;  %v2186_v18 = vld [vmem:[%s3440_s8] ss:$0 sm:$0xff] }
0x11c4   :  { %v939_v21 = vadd.f32 %v937_v19, %v3152_v15 }
0x11c6   :  { %2678 = vtanh.f32 %v939_v21  ;;  %v2183_v23 = vmul.f32 -1.442695, %v939_v21 }
0x11c8   :  { %2680 = vpow2.f32 %v2183_v23 }
0x11d0   :  { %v2679_v22 = vpop.eup %2678 }
0x11d1   :  { %952 = vrot.lane.b32.xlu1 %v2679_v22, %s2954_s4 }
0x11d2   :  { %v2681_v24 = vpop.eup %2680 }
0x11d3   :  { %v943_v25 = vadd.f32 1.0, %v2681_v24 }
0x11d5   :  { %2682 = vrcp.f32 %v943_v25 }
0x11df   :  { %v2683_v26 = vpop.eup %2682 }
0x11e0   :  { %v950_v30 = vmul.f32 %v2683_v26, %v948_v29 }
0x1243   :  { %v953_v27 = vpop.permute.xlu1 %952 }
0x1244   :  { %v955_v28 = vmul.f32 %v2683_v26, %v953_v27 }
0x1246   :  { %957 = vrot.lane.b32.xlu0 %v955_v28, %s2955_s6 }
0x12b8   :  { %v958_v31 = vpop.permute.xlu0 %957 }
0x12b9   :  { %v960_v32 = vadd.f32 %v958_v31, %v950_v30 }
0x12bb   :  { %2684 = vtanh.f32 %v960_v32 }
0x12c5   :  { %v2685_v33 = vpop.eup %2684 }
0x12c6   :  { %963 = vrot.lane.b32.xlu1 %v2685_v33, %s2954_s4 }
0x1338   :  { %v964_v35 = vpop.permute.xlu1 %963 }
0x1339   :  { %v966_v36 = vmul.f32 %v2683_v26, %v964_v35 }
0x133b   :  { %v973_v37 = vrot.slane %v966_v36, 6 }
0x133d   :  { %974 = vrot.lane.b32.xlu0 %v973_v37, %s2955_s6 }
0x13af   :  { %v975_v38 = vpop.permute.xlu0 %974 }
0x13b0   :  { %2391 = vmatmul.mubr.msk.f32.vlgmr.msra.gmra.mrb[8].mxu0 %vm195_vm2, %v975_v38 }
0x13b1   :  { %2412 = vmatprep.mubr.msk.f32.mxu0 %vm2952_vm0, %v2953_v1  ;;  %2562 = vmatpush3.bf16.msra.mxu0 %v3260_v62 }
0x13b2   :  { %2563 = vmatprep.subr.bf16.mxu0 %v2951_v0 }
0x1483   :  { %v1044_v39 = vpop.f32.mrb[8].mxu0 }
0x1484   :  { %v1049_v40 = vrot.slane %v1044_v39, 1  ;;  %v2392_v41 = vpop.f32.mrb[9].mxu0 }
0x1486   :  { %v1051_v42 = vadd.f32 %v1049_v40, %v3152_v15  ;;  %v1060_v15 = vrot.slane %v960_v32, 7 }
0x1488   :  { %2686 = vtanh.f32 %v1051_v42  ;;  %v2185_v44 = vmul.f32 -1.442695, %v1051_v42 }
0x148a   :  { %2688 = vpow2.f32 %v2185_v44 }
0x1492   :  { %v2687_v43 = vpop.eup %2686 }
0x1493   :  { %1064 = vrot.lane.b32.xlu1 %v2687_v43, %s2954_s4 }
0x1494   :  { %v2689_v45 = vpop.eup %2688 }
0x1495   :  { %v1055_v46 = vadd.f32 1.0, %v2689_v45 }
0x1497   :  { %2690 = vrcp.f32 %v1055_v46 }
0x14a1   :  { %v2691_v47 = vpop.eup %2690 }
0x14a2   :  { %v1062_v50 = vmul.f32 %v2691_v47, %v1060_v15 }
0x1505   :  { %v1065_v48 = vpop.permute.xlu1 %1064 }
0x1506   :  { %v1067_v49 = vmul.f32 %v2691_v47, %v1065_v48 }
0x1508   :  { %1069 = vrot.lane.b32.xlu0 %v1067_v49, %s2955_s6 }
0x150c   :  { %408 = vrot.lane.b32.xlu0 %v3171_v53, %s2955_s6 }
0x1510   :  { %632 = vrot.lane.b32.xlu0 %v3201_v34, %s2955_s6  ;;  %v1091_v34 = vld [vmem:[#allocation9] sm:$0xff] }
0x1511   :  { %v2555_v59 = vpack.c.bf16 %v1092_v58, %v1091_v34 }
0x1513   :  { %2556 = vmatpush3.bf16.msra.mxu1 %v2555_v59 }
0x1514   :  { %856 = vrot.lane.b32.xlu0 %v854_v14, %s2955_s6  ;;  %2557 = vmatprep.subr.bf16.mxu1 %v2951_v0 }
0x1517   :  { %2559 = vmatpush3.bf16.msra.mxu1 %v2558_v3 }
0x1518   :  { %2566 = vmatprep.subr.bf16.mxu1 %v2951_v0 }
0x157a   :  { %v1070_v51 = vpop.permute.xlu0 %1069 }
0x157b   :  { %v3251_v52 = vadd.f32 %v1070_v51, %v1062_v50 }
0x157d   :  { %2692 = vtanh.f32 %v3251_v52 }
0x157e   :  { %v409_v54 = vpop.permute.xlu0 %408 }
0x157f   :  { %412 = vst.msk [vmem:[#allocation2] sm:$0x2] %vm411_vm4, %v409_v54 }
0x1582   :  { %v633_v56 = vpop.permute.xlu0 %632 }
0x1583   :  { %636 = vst.msk [vmem:[#allocation2] sm:$0x8] %vm635_vm5, %v633_v56 }
0x1586   :  { %v857_v53 = vpop.permute.xlu0 %856 }
0x1587   :  { %v2693_v57 = vpop.eup %2692  ;;  %860 = vst.msk [vmem:[#allocation2] sm:$0x20] %vm859_vm6, %v857_v53 }
0x1588   :  { %1075 = vrot.lane.b32.xlu1 %v2693_v57, %s2954_s4 }
0x158c   :  { %520 = vrot.lane.b32.xlu1 %v3186_v13, %s2955_s6  ;;  %v3264_v13 = vpack.c.bf16 %v1098_v4, %v1097_v2 }
0x158e   :  { %2565 = vmatpush3.bf16.msra.mxu0 %v3264_v13 }
0x158f   :  { %2572 = vmatprep.subr.bf16.mxu0 %v2951_v0 }
0x1590   :  { %744 = vrot.lane.b32.xlu1 %v3216_v55, %s2955_s6  ;;  %v1180_v55 = vld [vmem:[%s3433_s1 + $0x1] sm:$0x1] }
0x1591   :  { %2413 = vmatmul.mubr.msk.f32.vlgmr.msra.gmra.mrb[10].mxu0 %vm195_vm2, %v1180_v55 }
0x1592   :  { %2574 = vmatpush3.bf16.msra.mxu0 %v3260_v62  ;;  %2434 = vmatprep.mubr.msk.f32.mxu0 %vm2952_vm0, %v2953_v1 }
0x1593   :  { %2575 = vmatprep.subr.bf16.mxu0 %v2951_v0 }
0x1594   :  { %968 = vrot.lane.b32.xlu1 %v966_v36, %s2955_s6 }
0x1596   :  { %2577 = vmatpush3.bf16.msra.mxu0 %v3264_v13 }
0x1597   :  { %2584 = vmatprep.subr.bf16.mxu0 %v2951_v0 }
0x15fa   :  { %v1076_v6 = vpop.permute.xlu1 %1075 }
0x15fb   :  { %v1078_v10 = vmul.f32 %v2691_v47, %v1076_v6 }
0x15fd   :  { %1080 = vrot.lane.b32.xlu0 %v1078_v10, %s2955_s6 }
0x15fe   :  { %v521_v7 = vpop.permute.xlu1 %520 }
0x15ff   :  { %524 = vst.msk [vmem:[#allocation2] sm:$0x4] %vm523_vm7, %v521_v7 }
0x1601   :  { %1264 = vrot.lane.b32.xlu0 %v1181_v8, %s2955_s6 }
0x1602   :  { %v745_v9 = vpop.permute.xlu1 %744 }
0x1603   :  { %748 = vst.msk [vmem:[#allocation2] sm:$0x10] %vm747_vm8, %v745_v9 }
0x1606   :  { %v969_v11 = vpop.permute.xlu1 %968 }
0x1607   :  { %972 = vst.msk [vmem:[#allocation2] sm:$0x40] %vm971_vm9, %v969_v11 }
0x1664   :  { %v1251_v16 = vpop.f32.mrb[10].mxu0 }
0x1665   :  { %v2414_v17 = vpop.f32.mrb[11].mxu0 }
0x166f   :  { %v1081_v12 = vpop.permute.xlu0 %1080 }
0x1670   :  { %1084 = vst.msk [vmem:[#allocation2] sm:$0x80] %vm1083_vm10, %v1081_v12  ;;  %1085 = vst.msk [vmem:[#allocation13 - $0x7] sm:$0x80] %vm1083_vm10, %v1081_v12 }
0x1673   :  { %v1265_v30 = vpop.permute.xlu0 %1264 }
0x1677   :  { %v1100_v14 = vld [vmem:[#allocation2] sm:$0xff] }
0x1678   :  { %2402 = vmatmul.mubr.msk.f32.vlgmr.msra.gmra.mrb[8].mxu1 %vm195_vm2, %v1100_v14 }
0x1679   :  { %2568 = vmatpush3.bf16.msra.mxu1 %v3260_v62  ;;  %2423 = vmatprep.mubr.msk.f32.mxu1 %vm2952_vm0, %v2953_v1 }
0x167a   :  { %2569 = vmatprep.subr.bf16.mxu1 %v2951_v0 }
0x167d   :  { %2571 = vmatpush3.bf16.msra.mxu1 %v3264_v13 }
0x167e   :  { %2578 = vmatprep.subr.bf16.mxu1 %v2951_v0 }
0x174b   :  { %v1176_v19 = vpop.f32.mrb[8].mxu1 }
0x174c   :  { %v3294_v20 = vadd.f32 %v2186_v18, %v1176_v19  ;;  %v2403_v21 = vpop.f32.mrb[9].mxu1 }
0x174e   :  { %v1255_v22 = vadd.f32 %v1251_v16, %v3294_v20 }
0x1750   :  { %2694 = vtanh.f32 %v1255_v22  ;;  %v2189_v24 = vmul.f32 -1.442695, %v1255_v22 }
0x1752   :  { %2696 = vpow2.f32 %v2189_v24 }
0x175a   :  { %v2695_v23 = vpop.eup %2694 }
0x175b   :  { %1269 = vrot.lane.b32.xlu1 %v2695_v23, %s2954_s4 }
0x175c   :  { %v2697_v25 = vpop.eup %2696 }
0x175d   :  { %v1259_v26 = vadd.f32 1.0, %v2697_v25 }
0x175f   :  { %2698 = vrcp.f32 %v1259_v26 }
0x1769   :  { %v2699_v27 = vpop.eup %2698 }
0x176a   :  { %v1267_v31 = vmul.f32 %v2699_v27, %v1265_v30 }
0x17cd   :  { %v1270_v28 = vpop.permute.xlu1 %1269 }
0x17ce   :  { %v1272_v29 = vmul.f32 %v2699_v27, %v1270_v28 }
0x17d0   :  { %1274 = vrot.lane.b32.xlu1 %v1272_v29, %s2955_s6 }
0x1842   :  { %v1275_v32 = vpop.permute.xlu1 %1274 }
0x1843   :  { %v1277_v33 = vadd.f32 %v1275_v32, %v1267_v31 }
0x1845   :  { %2700 = vtanh.f32 %v1277_v33  ;;  %v1371_v15 = vrot.slane %v1277_v33, 7 }
0x184f   :  { %v2701_v35 = vpop.eup %2700 }
0x1850   :  { %1280 = vrot.lane.b32.xlu0 %v2701_v35, %s2954_s4 }
0x18c2   :  { %v1281_v36 = vpop.permute.xlu0 %1280 }
0x18c3   :  { %v1283_v37 = vmul.f32 %v2699_v27, %v1281_v36 }
0x18c5   :  { %1285 = vrot.lane.b32.xlu1 %v1283_v37, %s2955_s6 }
0x1937   :  { %v1286_v38 = vpop.permute.xlu1 %1285 }
0x1938   :  { %2424 = vmatmul.mubr.msk.f32.vlgmr.msra.gmra.mrb[10].mxu1 %vm195_vm2, %v1286_v38 }
0x1939   :  { %2580 = vmatpush3.bf16.msra.mxu1 %v3260_v62  ;;  %2445 = vmatprep.mubr.msk.f32.mxu1 %vm2952_vm0, %v2953_v1 }
0x193a   :  { %2581 = vmatprep.subr.bf16.mxu1 %v2951_v0 }
0x193d   :  { %2583 = vmatpush3.bf16.msra.mxu1 %v3264_v13 }
0x193e   :  { %2590 = vmatprep.subr.bf16.mxu1 %v2951_v0 }
0x1a0b   :  { %v1355_v39 = vpop.f32.mrb[10].mxu1 }
0x1a0c   :  { %v1360_v40 = vrot.slane %v1355_v39, 7  ;;  %v2425_v41 = vpop.f32.mrb[11].mxu1 }
0x1a0e   :  { %v1362_v42 = vadd.f32 %v1360_v40, %v3294_v20 }
0x1a10   :  { %2702 = vtanh.f32 %v1362_v42  ;;  %v2191_v44 = vmul.f32 -1.442695, %v1362_v42 }
0x1a12   :  { %2704 = vpow2.f32 %v2191_v44 }
0x1a1a   :  { %v2703_v43 = vpop.eup %2702 }
0x1a1b   :  { %1375 = vrot.lane.b32.xlu0 %v2703_v43, %s2954_s4 }
0x1a1c   :  { %v2705_v45 = vpop.eup %2704 }
0x1a1d   :  { %v1366_v46 = vadd.f32 1.0, %v2705_v45 }
0x1a1f   :  { %2706 = vrcp.f32 %v1366_v46 }
0x1a29   :  { %v2707_v47 = vpop.eup %2706 }
0x1a2a   :  { %v1373_v50 = vmul.f32 %v2707_v47, %v1371_v15 }
0x1a8d   :  { %v1376_v48 = vpop.permute.xlu0 %1375 }
0x1a8e   :  { %v1378_v49 = vmul.f32 %v2707_v47, %v1376_v48 }
0x1a90   :  { %1380 = vrot.lane.b32.xlu1 %v1378_v49, %s2955_s6 }
0x1b02   :  { %v1381_v51 = vpop.permute.xlu1 %1380 }
0x1b03   :  { %v1383_v54 = vadd.f32 %v1381_v51, %v1373_v50 }
0x1b05   :  { %2708 = vtanh.f32 %v1383_v54  ;;  %v1478_v7 = vrot.slane %v1383_v54, 7 }
0x1b0f   :  { %v2709_v56 = vpop.eup %2708 }
0x1b10   :  { %1386 = vrot.lane.b32.xlu0 %v2709_v56, %s2954_s4 }
0x1b82   :  { %v1387_v53 = vpop.permute.xlu0 %1386 }
0x1b83   :  { %v1389_v57 = vmul.f32 %v2707_v47, %v1387_v53 }
0x1b85   :  { %v1391_v34 = vrot.slane %v1389_v57, 1 }
0x1b87   :  { %1392 = vrot.lane.b32.xlu1 %v1391_v34, %s2955_s6 }
0x1bf9   :  { %v1393_v58 = vpop.permute.xlu1 %1392 }
0x1bfa   :  { %2435 = vmatmul.mubr.msk.f32.vlgmr.msra.gmra.mrb[12].mxu0 %vm195_vm2, %v1393_v58 }
0x1bfb   :  { %2586 = vmatpush3.bf16.msra.mxu0 %v3260_v62  ;;  %2456 = vmatprep.mubr.msk.f32.mxu0 %vm2952_vm0, %v2953_v1 }
0x1bfc   :  { %2587 = vmatprep.subr.bf16.mxu0 %v2951_v0 }
0x1bff   :  { %2589 = vmatpush3.bf16.msra.mxu0 %v3264_v13 }
0x1c00   :  { %2596 = vmatprep.subr.bf16.mxu0 %v2951_v0 }
0x1ccd   :  { %v1462_v59 = vpop.f32.mrb[12].mxu0 }
0x1cce   :  { %v1467_v60 = vrot.slane %v1462_v59, 6  ;;  %v2436_v61 = vpop.f32.mrb[13].mxu0 }
0x1cd0   :  { %v1469_v63 = vadd.f32 %v1467_v60, %v3294_v20 }
0x1cd2   :  { %2710 = vtanh.f32 %v1469_v63  ;;  %v2193_v2 = vmul.f32 -1.442695, %v1469_v63 }
0x1cd4   :  { %2712 = vpow2.f32 %v2193_v2 }
0x1cdc   :  { %v2711_v5 = vpop.eup %2710 }
0x1cdd   :  { %1482 = vrot.lane.b32.xlu0 %v2711_v5, %s2954_s4 }
0x1cde   :  { %v2713_v3 = vpop.eup %2712 }
0x1cdf   :  { %v1473_v4 = vadd.f32 1.0, %v2713_v3 }
0x1ce1   :  { %2714 = vrcp.f32 %v1473_v4 }
0x1ceb   :  { %v2715_v55 = vpop.eup %2714 }
0x1cec   :  { %v1480_v8 = vmul.f32 %v2715_v55, %v1478_v7 }
0x1d4f   :  { %v1483_v6 = vpop.permute.xlu0 %1482 }
0x1d50   :  { %v1485_v10 = vmul.f32 %v2715_v55, %v1483_v6 }
0x1d52   :  { %1487 = vrot.lane.b32.xlu1 %v1485_v10, %s2955_s6 }
0x1dc4   :  { %v1488_v9 = vpop.permute.xlu1 %1487 }
0x1dc5   :  { %v1490_v11 = vadd.f32 %v1488_v9, %v1480_v8 }
0x1dc7   :  { %2716 = vtanh.f32 %v1490_v11  ;;  %v1585_v31 = vrot.slane %v1490_v11, 7 }
0x1dd1   :  { %v2717_v12 = vpop.eup %2716 }
0x1dd2   :  { %1493 = vrot.lane.b32.xlu0 %v2717_v12, %s2954_s4 }
0x1e44   :  { %v1494_v14 = vpop.permute.xlu0 %1493 }
0x1e45   :  { %v1496_v16 = vmul.f32 %v2715_v55, %v1494_v14 }
0x1e47   :  { %v1498_v17 = vrot.slane %v1496_v16, 2 }
0x1e49   :  { %1499 = vrot.lane.b32.xlu1 %v1498_v17, %s2955_s6 }
0x1ebb   :  { %v1500_v18 = vpop.permute.xlu1 %1499 }
0x1ebc   :  { %2446 = vmatmul.mubr.msk.f32.vlgmr.msra.gmra.mrb[12].mxu1 %vm195_vm2, %v1500_v18 }
0x1ebd   :  { %2592 = vmatpush3.bf16.msra.mxu1 %v3260_v62  ;;  %2467 = vmatprep.mubr.msk.f32.mxu1 %vm2952_vm0, %v2953_v1 }
0x1ebe   :  { %2593 = vmatprep.subr.bf16.mxu1 %v2951_v0 }
0x1ec1   :  { %2595 = vmatpush3.bf16.msra.mxu1 %v3264_v13 }
0x1ec2   :  { %2602 = vmatprep.subr.bf16.mxu1 %v2951_v0 }
0x1f8f   :  { %v1569_v19 = vpop.f32.mrb[12].mxu1 }
0x1f90   :  { %v1574_v21 = vrot.slane %v1569_v19, 5  ;;  %v2447_v22 = vpop.f32.mrb[13].mxu1 }
0x1f92   :  { %v1576_v23 = vadd.f32 %v1574_v21, %v3294_v20 }
0x1f94   :  { %2718 = vtanh.f32 %v1576_v23  ;;  %v2195_v25 = vmul.f32 -1.442695, %v1576_v23 }
0x1f96   :  { %2720 = vpow2.f32 %v2195_v25 }
0x1f9e   :  { %v2719_v24 = vpop.eup %2718 }
0x1f9f   :  { %1589 = vrot.lane.b32.xlu0 %v2719_v24, %s2954_s4 }
0x1fa0   :  { %v2721_v26 = vpop.eup %2720 }
0x1fa1   :  { %v1580_v27 = vadd.f32 1.0, %v2721_v26 }
0x1fa3   :  { %2722 = vrcp.f32 %v1580_v27 }
0x1fad   :  { %v2723_v28 = vpop.eup %2722 }
0x1fae   :  { %v1587_v32 = vmul.f32 %v2723_v28, %v1585_v31 }
0x2011   :  { %v1590_v29 = vpop.permute.xlu0 %1589 }
0x2012   :  { %v1592_v30 = vmul.f32 %v2723_v28, %v1590_v29 }
0x2014   :  { %1594 = vrot.lane.b32.xlu1 %v1592_v30, %s2955_s6 }
0x2086   :  { %v1595_v33 = vpop.permute.xlu1 %1594 }
0x2087   :  { %v1597_v35 = vadd.f32 %v1595_v33, %v1587_v32 }
0x2089   :  { %2724 = vtanh.f32 %v1597_v35  ;;  %v1692_v51 = vrot.slane %v1597_v35, 7 }
0x2093   :  { %v2725_v36 = vpop.eup %2724 }
0x2094   :  { %1600 = vrot.lane.b32.xlu0 %v2725_v36, %s2954_s4 }
0x2106   :  { %v1601_v37 = vpop.permute.xlu0 %1600 }
0x2107   :  { %v1603_v38 = vmul.f32 %v2723_v28, %v1601_v37 }
0x2109   :  { %v1605_v39 = vrot.slane %v1603_v38, 3 }
0x210b   :  { %1606 = vrot.lane.b32.xlu1 %v1605_v39, %s2955_s6 }
0x217d   :  { %v1607_v40 = vpop.permute.xlu1 %1606 }
0x217e   :  { %2457 = vmatmul.mubr.msk.f32.vlgmr.msra.gmra.mrb[14].mxu0 %vm195_vm2, %v1607_v40 }
0x217f   :  { %2598 = vmatpush3.bf16.msra.mxu0 %v3260_v62  ;;  %2478 = vmatprep.mubr.msk.f32.mxu0 %vm2952_vm0, %v2953_v1 }
0x2180   :  { %2599 = vmatprep.subr.bf16.mxu0 %v2951_v0 }
0x2183   :  { %2601 = vmatpush3.bf16.msra.mxu0 %v3264_v13 }
0x2184   :  { %2608 = vmatprep.subr.bf16.mxu0 %v2951_v0 }
0x2251   :  { %v1676_v41 = vpop.f32.mrb[14].mxu0 }
0x2252   :  { %v1681_v42 = vrot.slane %v1676_v41, 4  ;;  %v2458_v43 = vpop.f32.mrb[15].mxu0 }
0x2254   :  { %v1683_v44 = vadd.f32 %v1681_v42, %v3294_v20 }
0x2256   :  { %2726 = vtanh.f32 %v1683_v44  ;;  %v2197_v46 = vmul.f32 -1.442695, %v1683_v44 }
0x2258   :  { %2728 = vpow2.f32 %v2197_v46 }
0x2260   :  { %v2727_v45 = vpop.eup %2726 }
0x2261   :  { %1696 = vrot.lane.b32.xlu0 %v2727_v45, %s2954_s4 }
0x2262   :  { %v2729_v47 = vpop.eup %2728 }
0x2263   :  { %v1687_v48 = vadd.f32 1.0, %v2729_v47 }
0x2265   :  { %2730 = vrcp.f32 %v1687_v48 }
0x226f   :  { %v2731_v49 = vpop.eup %2730 }
0x2270   :  { %v1694_v54 = vmul.f32 %v2731_v49, %v1692_v51 }
0x22d3   :  { %v1697_v15 = vpop.permute.xlu0 %1696 }
0x22d4   :  { %v1699_v50 = vmul.f32 %v2731_v49, %v1697_v15 }
0x22d6   :  { %1701 = vrot.lane.b32.xlu1 %v1699_v50, %s2955_s6 }
0x2348   :  { %v1702_v56 = vpop.permute.xlu1 %1701 }
0x2349   :  { %v1704_v53 = vadd.f32 %v1702_v56, %v1694_v54 }
0x234b   :  { %2732 = vtanh.f32 %v1704_v53 }
0x2355   :  { %v2733_v57 = vpop.eup %2732 }
0x2356   :  { %1707 = vrot.lane.b32.xlu0 %v2733_v57, %s2954_s4  ;;  %v2044_v57 = vld [vmem:[%s3441_s9 + $0x10] sm:$0xff] }
0x23c8   :  { %v1708_v34 = vpop.permute.xlu0 %1707 }
0x23c9   :  { %v1710_v58 = vmul.f32 %v2731_v49, %v1708_v34 }
0x23cb   :  { %v1712_v59 = vrot.slane %v1710_v58, 4  ;;  %v2045_v58 = vld [vmem:[%s3441_s9 + $0x18] sm:$0xff] }
0x23cd   :  { %1713 = vrot.lane.b32.xlu1 %v1712_v59, %s2955_s6  ;;  %v2612_v59 = vpack.c.bf16 %v2045_v58, %v2044_v57 }
0x243f   :  { %v1714_v60 = vpop.permute.xlu1 %1713 }
0x2440   :  { %2468 = vmatmul.mubr.msk.f32.vlgmr.msra.gmra.mrb[14].mxu1 %vm195_vm2, %v1714_v60 }
0x2441   :  { %2604 = vmatpush3.bf16.msra.mxu1 %v3260_v62  ;;  %2489 = vmatprep.mubr.msk.f32.mxu1 %vm2952_vm0, %v2953_v1 }
0x2442   :  { %2605 = vmatprep.subr.bf16.mxu1 %v2951_v0 }
0x2445   :  { %2607 = vmatpush3.bf16.msra.mxu1 %v3264_v13  ;;  %v1799_v13 = vrot.slane %v1704_v53, 7  ;;  %v2043_v53 = vld [vmem:[%s3441_s9 + $0x8] sm:$0xff] }
0x2513   :  { %v1783_v61 = vpop.f32.mrb[14].mxu1 }
0x2514   :  { %v1788_v63 = vrot.slane %v1783_v61, 3  ;;  %v2469_v5 = vpop.f32.mrb[15].mxu1 }
0x2516   :  { %v1790_v2 = vadd.f32 %v1788_v63, %v3294_v20 }
0x2518   :  { %2734 = vtanh.f32 %v1790_v2  ;;  %v2199_v4 = vmul.f32 -1.442695, %v1790_v2 }
0x251a   :  { %2736 = vpow2.f32 %v2199_v4 }
0x2522   :  { %v2735_v3 = vpop.eup %2734 }
0x2523   :  { %1803 = vrot.lane.b32.xlu0 %v2735_v3, %s2954_s4 }
0x2524   :  { %v2737_v55 = vpop.eup %2736 }
0x2525   :  { %v1794_v62 = vadd.f32 1.0, %v2737_v55 }
0x2527   :  { %2738 = vrcp.f32 %v1794_v62 }
0x2531   :  { %v2739_v6 = vpop.eup %2738 }
0x2532   :  { %v1801_v8 = vmul.f32 %v2739_v6, %v1799_v13 }
0x2595   :  { %v1804_v10 = vpop.permute.xlu0 %1803 }
0x2596   :  { %v1806_v7 = vmul.f32 %v2739_v6, %v1804_v10 }
0x2598   :  { %1808 = vrot.lane.b32.xlu1 %v1806_v7, %s2955_s6 }
0x260a   :  { %v1809_v9 = vpop.permute.xlu1 %1808 }
0x260b   :  { %v1811_v11 = vadd.f32 %v1809_v9, %v1801_v8 }
0x260d   :  { %2740 = vtanh.f32 %v1811_v11 }
0x2617   :  { %v2741_v12 = vpop.eup %2740 }
0x2618   :  { %1814 = vrot.lane.b32.xlu0 %v2741_v12, %s2954_s4 }
0x268a   :  { %v1815_v14 = vpop.permute.xlu0 %1814 }
0x268b   :  { %v1817_v16 = vmul.f32 %v2739_v6, %v1815_v14 }
0x268d   :  { %v1819_v17 = vrot.slane %v1817_v16, 5 }
0x268f   :  { %1820 = vrot.lane.b32.xlu1 %v1819_v17, %s2955_s6 }
0x2701   :  { %v1821_v18 = vpop.permute.xlu1 %1820 }
0x2702   :  { %2479 = vmatmul.mubr.msk.f32.vlgmr.msra.gmra.mrb[16].mxu0 %vm195_vm2, %v1821_v18 }
0x2703   :  { %2500 = vmatprep.mubr.msk.f32.mxu0 %vm2952_vm0, %v2953_v1  ;;  %v1906_v1 = vrot.slane %v1811_v11, 7 }
0x27d5   :  { %v1890_v19 = vpop.f32.mrb[16].mxu0 }
0x27d6   :  { %v1895_v21 = vrot.slane %v1890_v19, 2  ;;  %v2480_v22 = vpop.f32.mrb[17].mxu0 }
0x27d8   :  { %v1897_v23 = vadd.f32 %v1895_v21, %v3294_v20 }
0x27da   :  { %2742 = vtanh.f32 %v1897_v23  ;;  %v2201_v25 = vmul.f32 -1.442695, %v1897_v23 }
0x27dc   :  { %2744 = vpow2.f32 %v2201_v25 }
0x27e4   :  { %v2743_v24 = vpop.eup %2742 }
0x27e5   :  { %1910 = vrot.lane.b32.xlu0 %v2743_v24, %s2954_s4 }
0x27e6   :  { %v2745_v26 = vpop.eup %2744 }
0x27e7   :  { %v1901_v27 = vadd.f32 1.0, %v2745_v26 }
0x27e9   :  { %2746 = vrcp.f32 %v1901_v27 }
0x27f3   :  { %v2747_v28 = vpop.eup %2746 }
0x27f4   :  { %v1908_v31 = vmul.f32 %v2747_v28, %v1906_v1 }
0x2857   :  { %v1911_v29 = vpop.permute.xlu0 %1910 }
0x2858   :  { %v1913_v30 = vmul.f32 %v2747_v28, %v1911_v29 }
0x285a   :  { %1915 = vrot.lane.b32.xlu1 %v1913_v30, %s2955_s6 }
0x28cc   :  { %v1916_v32 = vpop.permute.xlu1 %1915 }
0x28cd   :  { %v1918_v33 = vadd.f32 %v1916_v32, %v1908_v31 }
0x28cf   :  { %2748 = vtanh.f32 %v1918_v33  ;;  %v2013_v50 = vrot.slane %v1918_v33, 7 }
0x28d9   :  { %v2749_v35 = vpop.eup %2748 }
0x28da   :  { %1921 = vrot.lane.b32.xlu0 %v2749_v35, %s2954_s4 }
0x294c   :  { %v1922_v36 = vpop.permute.xlu0 %1921 }
0x294d   :  { %v1924_v37 = vmul.f32 %v2747_v28, %v1922_v36 }
0x294f   :  { %v1926_v38 = vrot.slane %v1924_v37, 6 }
0x2951   :  { %1927 = vrot.lane.b32.xlu1 %v1926_v38, %s2955_s6 }
0x29c3   :  { %v1928_v39 = vpop.permute.xlu1 %1927 }
0x29c4   :  { %2490 = vmatmul.mubr.msk.f32.vlgmr.msra.gmra.mrb[16].mxu1 %vm195_vm2, %v1928_v39 }
0x2a97   :  { %v1997_v40 = vpop.f32.mrb[16].mxu1 }
0x2a98   :  { %v2002_v41 = vrot.slane %v1997_v40, 1  ;;  %v2491_v42 = vpop.f32.mrb[17].mxu1 }
0x2a9a   :  { %v2004_v43 = vadd.f32 %v2002_v41, %v3294_v20  ;;  %v2042_v20 = vld [vmem:[%s3441_s9] sm:$0xff]  ;;  %s2957_s9 = smov [#allocation13]  }
0x2a9b   :  { %v2609_v34 = vpack.c.bf16 %v2043_v53, %v2042_v20  ;;  %s2140_s19 = sshll.u32 %s2957_s9, 4  ;;  %s2141_s19 = int_to_ptr.vmem [resolvable:$true] %s2140_s19 }
0x2a9c   :  { %2750 = vtanh.f32 %v2004_v43  ;;  %v2203_v45 = vmul.f32 -1.442695, %v2004_v43  ;;  %s2868_s21 = scalar_lea.vmem %s2141_s19, 32  ;;  %p2873_p13 = scmp.lt.s32.totalorder %s2141_s19, %s2141_s19 }
0x2a9d   :  { %2610 = vmatpush3.bf16.msra.mxu0 %v2609_v34  ;;  %p2869_p12 = scmp.ne.s32.totalorder %s2141_s19, %s2868_s21  ;;  %p2874_p0 = scmp.lt.s32.totalorder %s2868_s21, %s2868_s21 }
0x2a9e   :  { %2752 = vpow2.f32 %v2203_v45  ;;  %2611 = vmatprep.subr.bf16.mxu0 %v2951_v0 }
0x2a9f   :  { %p2875_p1 = por %p2874_p0, %p2873_p13 }
0x2aa1   :  { %2613 = vmatpush3.bf16.msra.mxu0 %v2612_v59  ;;  %p2876_p2 = pnand %p2875_p1, %p2869_p12 }
0x2aa6   :  { %v2751_v44 = vpop.eup %2750 }
0x2aa7   :  { %2017 = vrot.lane.b32.xlu0 %v2751_v44, %s2954_s4 }
0x2aa8   :  { %v2753_v46 = vpop.eup %2752 }
0x2aa9   :  { %v2008_v47 = vadd.f32 1.0, %v2753_v46 }
0x2aab   :  { %2754 = vrcp.f32 %v2008_v47 }
0x2ab5   :  { %v2755_v48 = vpop.eup %2754 }
0x2ab6   :  { %v2015_v51 = vmul.f32 %v2755_v48, %v2013_v50 }
0x2b19   :  { %v2018_v49 = vpop.permute.xlu0 %2017 }
0x2b1a   :  { %v2020_v15 = vmul.f32 %v2755_v48, %v2018_v49 }
0x2b1c   :  { %2022 = vrot.lane.b32.xlu1 %v2020_v15, %s2955_s6 }
0x2b8e   :  { %v2023_v54 = vpop.permute.xlu1 %2022 }
0x2b8f   :  { %v2025_v56 = vadd.f32 %v2023_v54, %v2015_v51 }
0x2b91   :  { %2756 = vtanh.f32 %v2025_v56 }
0x2b9b   :  { %v2757_v60 = vpop.eup %2756 }
0x2b9c   :  { %2028 = vrot.lane.b32.xlu0 %v2757_v60, %s2954_s4 }
0x2c0e   :  { %v2029_v61 = vpop.permute.xlu0 %2028 }
0x2c0f   :  { %v2031_v63 = vmul.f32 %v2755_v48, %v2029_v61 }
0x2c11   :  { %v2047_v5 = vrot.slane %v2031_v63, 7  ;;  %2033 = vrot.lane.b32.xlu0 %v2031_v63, %s2955_s6 }
0x2c13   :  { %2048 = vrot.lane.b32.xlu1 %v2047_v5, %s2955_s6 }
0x2c15   :  { %2038 = vrot.lane.b32.xlu0 %v2025_v56, %s2956_s26 }
0x2c17   :  { %1087 = vrot.lane.b32.xlu1 %v3251_v52, %s2956_s26 }
0x2c83   :  { %v2034_v2 = vpop.permute.xlu0 %2033 }
0x2c84   :  { %2036 = vst.msk [vmem:[#allocation13 - $0x6] sm:$0x80] %vm1083_vm10, %v2034_v2 }
0x2c85   :  { %v2049_v3 = vpop.permute.xlu1 %2048 }
0x2c86   :  { %2501 = vmatmul.mubr.msk.f32.vlgmr.msra.gmra.mrb[18].mxu0 %vm195_vm2, %v2049_v3 }
0x2c87   :  { %v2039_v0 = vpop.permute.xlu0 %2038 }
0x2c88   :  { %2041 = vst.msk [vmem:[#allocation15 - $0x6] sm:$0x80] %vm1083_vm10, %v2039_v0 }
0x2c89   :  { %v1088_v4 = vpop.permute.xlu1 %1087 }
0x2c8a   :  { %1090 = vst.msk [vmem:[#allocation15 - $0x7] sm:$0x80] %vm1083_vm10, %v1088_v4 }
0x2c8b   :  { %2879 = shalt.err (!%p2876_p2)
}
0x2c8c   :  { %s2880_s24 = scalar_lea.hbm %s3444_s12, 32 }
0x2c8d   :  { %p2881_p3 = scmp.ne.s32.totalorder %s3444_s12, %s2880_s24  ;;  %p2884_p4 = scmp.lt.u32.totalorder %s2880_s24, %s3444_s12 }
0x2c8f   :  { %p2886_p5 = pnand %p2884_p4, %p2881_p3 }
0x2c91   :  { %2889 = shalt.err (!%p2886_p5)
}
0x2c92   :  { %2143 = dma.vmem_to_hbm [thread:$0]  %s2141_s19, 32, %s3444_s12, [#allocation14]  }
0x2c93   :  { %s2958_s4 = smov [#allocation15]  }
0x2c94   :  { %s2150_s6 = sshll.u32 %s2958_s4, 4  ;;  %s2151_s6 = int_to_ptr.vmem [resolvable:$true] %s2150_s6 }
0x2c95   :  { %s2890_s28 = scalar_lea.vmem %s2151_s6, 32  ;;  %p2895_p7 = scmp.lt.s32.totalorder %s2151_s6, %s2151_s6 }
0x2c96   :  { %p2891_p6 = scmp.ne.s32.totalorder %s2151_s6, %s2890_s28  ;;  %p2896_p8 = scmp.lt.s32.totalorder %s2890_s28, %s2890_s28 }
0x2c98   :  { %p2897_p9 = por %p2896_p8, %p2895_p7 }
0x2c9a   :  { %p2898_p10 = pnand %p2897_p9, %p2891_p6 }
0x2c9c   :  { %2901 = shalt.err (!%p2898_p10)
}
0x2c9d   :  { %s2902_s14 = scalar_lea.hbm %s3445_s13, 32 }
0x2c9e   :  { %p2903_p11 = scmp.ne.s32.totalorder %s3445_s13, %s2902_s14  ;;  %p2906_p12 = scmp.lt.u32.totalorder %s2902_s14, %s3445_s13 }
0x2ca0   :  { %p2908_p13 = pnand %p2906_p12, %p2903_p11 }
0x2ca2   :  { %2911 = shalt.err (!%p2908_p13)
}
0x2ca3   :  { %2153 = dma.vmem_to_hbm [thread:$0]  %s2151_s6, 32, %s3445_s13, [#allocation14]   ;;  %v2046_v52 = vld [vmem:[%s3442_s10] sm:$0x1]  ;;  %vm2122_vm11 = vcmask 24576  }
0x2ca4   :  { %s2959_s2 = smov [#allocation12]  }
0x2ca5   :  { %s2130_s26 = sshll.u32 %s2959_s2, 4  ;;  %s2131_s26 = int_to_ptr.vmem [resolvable:$true] %s2130_s26 }
0x2ca6   :  { %s2912_s9 = scalar_lea.vmem %s2131_s26, 16  ;;  %s2916_s19 = scalar_lea.vmem %s2131_s26, 32 }
0x2ca7   :  { %p2913_p0 = scmp.ne.s32.totalorder %s2131_s26, %s2912_s9  ;;  %p2917_p1 = scmp.lt.s32.totalorder %s2131_s26, %s2131_s26 }
0x2ca8   :  { %p2918_p2 = scmp.lt.s32.totalorder %s2916_s19, %s2912_s9 }
0x2caa   :  { %p2919_p3 = por %p2918_p2, %p2917_p1 }
0x2cac   :  { %p2920_p4 = pnand %p2919_p3, %p2913_p0 }
0x2d59   :  { %v2118_v55 = vpop.f32.mrb[18].mxu0 }
0x2d5a   :  { %v2119_v62 = vadd.f32 %v2118_v55, %v2046_v52  ;;  %v2502_v6 = vpop.f32.mrb[19].mxu0 }
0x2d5c   :  { %2123 = vst.msk [vmem:[#allocation12] sm:$0x1] %vm2122_vm11, %v2119_v62 }
0x2d5d   :  { %2923 = shalt.err (!%p2920_p4)
}
0x2d5e   :  { %s2924_s10 = scalar_lea.hbm %s3443_s11, 16 }
0x2d5f   :  { %p2925_p5 = scmp.ne.s32.totalorder %s3443_s11, %s2924_s10  ;;  %p2928_p6 = scmp.lt.u32.totalorder %s2924_s10, %s3443_s11 }
0x2d61   :  { %p2930_p7 = pnand %p2928_p6, %p2925_p5 }
0x2d63   :  { %2933 = shalt.err (!%p2930_p7)
}
0x2d64   :  { %2133 = dma.vmem_to_hbm [thread:$0]  %s2131_s26, 16, %s3443_s11, [#allocation5]  }
0x2d65   :  { %2940 = dma.done.wait [#allocation5], 16  }
0x2d66   :  { %2941 = vsyncadd [#allocation5], 4294967280 }
0x2d67   :  { %2942 = dma.done.wait [#allocation14], 64  }
0x2d68   :  { %2943 = vsyncadd [#allocation14], 4294967232 }
0x2d69   :  { %2163 = vsyncpa [#allocation4], 1 }
0x2d6a   :  { %2164 = vsyncpa [#allocation7], 1 }
0x2d6b   :  { %2165 = vsyncpa [#allocation10], 1 }
0x2d6c   :  { %2166 = vsyncpa [#allocation5], 1 }
0x2d6d   :  { %2167 = vsyncpa [#allocation14], 1 }

</bundles_post_ra>
